<compile_context>
chip_gen: v7x
topology: tpu7x:2x2x1
jax: 0.10.0
libtpu: 0.0.40
codegen_flags: <defaults>
</compile_context>

<pallas_src>
import functools

import jax
import jax.numpy as jnp
from jax.experimental import pallas as pl
from jax.experimental.pallas import tpu as pltpu

HID = 5      # MLP hidden size, fixed by the module: MLP([dim_x, 5, ...])
HPAD = 16    # 3*HID padded to 16 (layer-1 fused width)
GROUP = 128  # one lane-aligned group per generated weight row


# ---------------------------------------------------------------------------
# Kernel
# ---------------------------------------------------------------------------
def _birnnvp_kernel(xf_ref, xb_ref,
                    fw_w1_ref, fw_b1_ref, fw_w2_ref, fw_b2_ref,
                    bw_w1_ref, bw_b1_ref, bw_w2_ref, bw_b2_ref,
                    fw_out_ref, bw_out_ref,
                    fw_s_ref, bw_s_ref,
                    *, dim_word, dim_hidden):
    t = pl.program_id(0)

    @pl.when(t == 0)
    def _():
        fw_s_ref[...] = jnp.zeros_like(fw_s_ref)
        bw_s_ref[...] = jnp.zeros_like(bw_s_ref)

    nx, nh = dim_word, dim_hidden

    def gen_and_step(x_t, senti, w1_ref, b1_ref, w2_ref, b2_ref):
        # Layer 1 of all three branch MLPs fused: (batch, HPAD)
        h = jnp.dot(x_t, w1_ref[...], preferred_element_type=jnp.float32)
        h = jnp.maximum(h + b1_ref[...], 0.0)
        # Layer 2: block-diagonal, lane-padded. p groups of 128 lanes:
        #   groups [0, nx)        -> rows of Wx  (first nh lanes valid)
        #   groups [nx, nx+nh)    -> rows of Wh
        #   group  nx+nh          -> B
        p = jnp.dot(h, w2_ref[...], preferred_element_type=jnp.float32)
        p = jnp.maximum(p + b2_ref[...], 0.0)

        acc = p[:, (nx + nh) * GROUP:(nx + nh + 1) * GROUP]          # B
        for i in range(nx):                                          # x · Wx
            acc = acc + x_t[:, i:i + 1] * p[:, i * GROUP:(i + 1) * GROUP]
        for r in range(nh):                                          # s · Wh
            acc = acc + senti[:, r:r + 1] * \
                p[:, (nx + r) * GROUP:(nx + r + 1) * GROUP]
        return jnp.maximum(acc, 0.0)                                 # (batch, 128)

    x_fw = xf_ref[0]                       # (batch, dim_word), time index t
    x_bw = xb_ref[0]                       # (batch, dim_word), time index l-1-t

    fw_new = gen_and_step(x_fw, fw_s_ref[...],
                          fw_w1_ref, fw_b1_ref, fw_w2_ref, fw_b2_ref)
    bw_new = gen_and_step(x_bw, bw_s_ref[...],
                          bw_w1_ref, bw_b1_ref, bw_w2_ref, bw_b2_ref)

    fw_s_ref[...] = fw_new
    bw_s_ref[...] = bw_new
    fw_out_ref[0] = fw_new[:, :nh].astype(fw_out_ref.dtype)
    bw_out_ref[0] = bw_new[:, :nh].astype(bw_out_ref.dtype)


# ---------------------------------------------------------------------------
# Parameter init (mirrors PyTorch: weights ~ U(-0.01, 0.01), biases = 0)
# ---------------------------------------------------------------------------
def init_birnnvp(key, dim_word, dim_hidden, dtype=jnp.float32):
    def init_pg(k):
        branch_out = {"Wx": dim_word * dim_hidden,
                      "Wh": dim_hidden * dim_hidden,
                      "Wb": dim_hidden}
        ks = jax.random.split(k, 6)
        raw, i = {}, 0
        for name, out_dim in branch_out.items():
            w1 = jax.random.uniform(ks[i], (dim_word, HID), dtype, -0.01, 0.01)
            i += 1
            w2 = jax.random.uniform(ks[i], (HID, out_dim), dtype, -0.01, 0.01)
            i += 1
            raw[name] = (w1, jnp.zeros((HID,), dtype),
                         w2, jnp.zeros((out_dim,), dtype))
        return raw

    kf, kb = jax.random.split(key)
    return init_pg(kf), init_pg(kb)


# ---------------------------------------------------------------------------
# One-time packing of a ParamGenerator into the fused / lane-padded layout
# ---------------------------------------------------------------------------
def pack_param_generator(raw, dim_word, dim_hidden):
    assert 3 * HID <= HPAD
    assert dim_hidden <= GROUP, "kernel assumes dim_hidden <= 128"
    H = dim_hidden
    n_groups = dim_word + H + 1

    w1x, b1x, w2x, b2x = raw["Wx"]
    w1h, b1h, w2h, b2h = raw["Wh"]
    w1b, b1b, w2b, b2b = raw["Wb"]

    w1 = jnp.zeros((dim_word, HPAD), jnp.float32)
    w1 = w1.at[:, 0:HID].set(w1x).at[:, HID:2 * HID].set(w1h) \
           .at[:, 2 * HID:3 * HID].set(w1b)
    b1 = jnp.zeros((1, HPAD), jnp.float32)
    b1 = b1.at[0, 0:HID].set(b1x).at[0, HID:2 * HID].set(b1h) \
           .at[0, 2 * HID:3 * HID].set(b1b)

    def group_pad(w, n):           # (rows, n*H) -> (rows, n*GROUP), zero-padded
        r = w.shape[0]
        w3 = w.reshape(r, n, H)
        w3 = jnp.pad(w3, ((0, 0), (0, 0), (0, GROUP - H)))
        return w3.reshape(r, n * GROUP)

    ncol = n_groups * GROUP
    w2 = jnp.zeros((HPAD, ncol), jnp.float32)
    w2 = w2.at[0:HID, 0:dim_word * GROUP].set(group_pad(w2x, dim_word))
    w2 = w2.at[HID:2 * HID,
               dim_word * GROUP:(dim_word + H) * GROUP].set(group_pad(w2h, H))
    w2 = w2.at[2 * HID:3 * HID, (dim_word + H) * GROUP:].set(group_pad(w2b, 1))

    b2 = jnp.zeros((1, ncol), jnp.float32)
    b2 = b2.at[:, 0:dim_word * GROUP].set(group_pad(b2x.reshape(1, -1), dim_word))
    b2 = b2.at[:, dim_word * GROUP:(dim_word + H) * GROUP] \
           .set(group_pad(b2h.reshape(1, -1), H))
    b2 = b2.at[:, (dim_word + H) * GROUP:].set(group_pad(b2b.reshape(1, -1), 1))

    return {"w1": w1, "b1": b1, "w2": w2, "b2": b2}


# ---------------------------------------------------------------------------
# Forward (single jit, single pallas_call)
# ---------------------------------------------------------------------------
@functools.partial(jax.jit, static_argnames=("dim_hidden",))
def birnnvp_forward(fw_packed, bw_packed, x, *, dim_hidden):
    batch, l, dim_word = x.shape
    H = dim_hidden
    ncol = (dim_word + H + 1) * GROUP
    xt = jnp.transpose(x.astype(jnp.float32), (1, 0, 2))   # (l, batch, dim_word)

    kernel = functools.partial(_birnnvp_kernel,
                               dim_word=dim_word, dim_hidden=H)

    def full2d(shape):
        return pl.BlockSpec(shape, lambda t: (0, 0))

    grid_spec = pltpu.PrefetchScalarGridSpec(
        num_scalar_prefetch=0,
        grid=(l,),
        in_specs=[
            pl.BlockSpec((1, batch, dim_word), lambda t: (t, 0, 0)),           # x, fw
            pl.BlockSpec((1, batch, dim_word), lambda t: (l - 1 - t, 0, 0)),   # x, bw
            full2d((dim_word, HPAD)), full2d((1, HPAD)),
            full2d((HPAD, ncol)), full2d((1, ncol)),
            full2d((dim_word, HPAD)), full2d((1, HPAD)),
            full2d((HPAD, ncol)), full2d((1, ncol)),
        ],
        out_specs=(
            pl.BlockSpec((1, batch, H), lambda t: (t, 0, 0)),
            pl.BlockSpec((1, batch, H), lambda t: (l - 1 - t, 0, 0)),
        ),
        scratch_shapes=[pltpu.VMEM((batch, GROUP), jnp.float32),
                        pltpu.VMEM((batch, GROUP), jnp.float32)],
    )

    fw_seq, bw_seq = pl.pallas_call(
        kernel,
        out_shape=(jax.ShapeDtypeStruct((l, batch, H), jnp.float32),
                   jax.ShapeDtypeStruct((l, batch, H), jnp.float32)),
        grid_spec=grid_spec,
        compiler_params=pltpu.CompilerParams(
            dimension_semantics=("arbitrary",)),   # sequential recurrence
    )(xt, xt,
      fw_packed["w1"], fw_packed["b1"], fw_packed["w2"], fw_packed["b2"],
      bw_packed["w1"], bw_packed["b1"], bw_packed["w2"], bw_packed["b2"])

    out = jnp.concatenate([fw_seq, bw_seq], axis=-1)        # (l, batch, 2H)
    return jnp.transpose(out, (1, 0, 2))                    # (batch, l, 2H)


# ---------------------------------------------------------------------------
# Plain-JAX reference (mirrors the PyTorch module exactly, from raw params)
# ---------------------------------------------------------------------------
def _reference_forward(raw_fw, raw_bw, x, dim_hidden):
    batch, l, dim_word = x.shape

    def mlp(v, w1, b1, w2, b2):
        h = jnp.maximum(v @ w1 + b1, 0.0)
        return jnp.maximum(h @ w2 + b2, 0.0)

    def step(senti, x_t, raw):
        wx = mlp(x_t, *raw["Wx"]).reshape(batch, dim_word, dim_hidden)
        wh = mlp(x_t, *raw["Wh"]).reshape(batch, dim_hidden, dim_hidden)
        wb = mlp(x_t, *raw["Wb"]).reshape(batch, dim_hidden)
        s = (jnp.einsum('bi,bij->bj', x_t, wx)
             + jnp.einsum('bi,bij->bj', senti, wh) + wb)
        return jnp.maximum(s, 0.0)

    fw = jnp.zeros((batch, dim_hidden), jnp.float32)
    bw = jnp.zeros((batch, dim_hidden), jnp.float32)
    fw_list, bw_list = [], []
    for t in range(l):
        fw = step(fw, x[:, t, :], raw_fw)
        fw_list.append(fw)
    for t in range(l - 1, -1, -1):
        bw = step(bw, x[:, t, :], raw_bw)
        bw_list.append(bw)
    bw_list.reverse()
    FW = jnp.stack(fw_list, 1)
    BW = jnp.stack(bw_list, 1)
    return jnp.concatenate([FW, BW], -1)


if __name__ == "__main__":
    batch, l, dim_word, dim_hidden = 2, 8, 8, 16

    key = jax.random.PRNGKey(0)
    k_params, k_x = jax.random.split(key)
    raw_fw, raw_bw = init_birnnvp(k_params, dim_word, dim_hidden)
    x = jax.random.normal(k_x, (batch, l, dim_word), jnp.float32)

    fw_packed = pack_param_generator(raw_fw, dim_word, dim_hidden)
    bw_packed = pack_param_generator(raw_bw, dim_word, dim_hidden)

    out = birnnvp_forward(fw_packed, bw_packed, x, dim_hidden=dim_hidden)
    out = jax.block_until_ready(out)

    ref = _reference_forward(raw_fw, raw_bw, x, dim_hidden)
    assert out.shape == (batch, l, 2 * dim_hidden)
    assert jnp.allclose(out, ref, atol=1e-5, rtol=1e-4), \
        float(jnp.max(jnp.abs(out - ref)))

    print("KERNEL_OK")
</pallas_src>

<mosaic_0001>
module attributes {stable_mosaic.version = 11 : i64} {
  func.func @_birnnvp_kernel(%arg0: i32, %arg1: memref<1x2x8xf32, #tpu.memory_space<vmem>>, %arg2: memref<1x2x8xf32, #tpu.memory_space<vmem>>, %arg3: memref<8x16xf32, #tpu.memory_space<vmem>>, %arg4: memref<1x16xf32, #tpu.memory_space<vmem>>, %arg5: memref<16x3200xf32, #tpu.memory_space<vmem>>, %arg6: memref<1x3200xf32, #tpu.memory_space<vmem>>, %arg7: memref<8x16xf32, #tpu.memory_space<vmem>>, %arg8: memref<1x16xf32, #tpu.memory_space<vmem>>, %arg9: memref<16x3200xf32, #tpu.memory_space<vmem>>, %arg10: memref<1x3200xf32, #tpu.memory_space<vmem>>, %arg11: memref<1x2x16xf32, #tpu.memory_space<vmem>>, %arg12: memref<1x2x16xf32, #tpu.memory_space<vmem>>, %arg13: memref<2x128xf32, #tpu.memory_space<vmem>>, %arg14: memref<2x128xf32, #tpu.memory_space<vmem>>) attributes {dimension_semantics = [#tpu.dimension_semantics<arbitrary>], iteration_bounds = array<i64: 8>, scalar_prefetch = 0 : i64, scratch_operands = 2 : i64, tpu.core_type = #tpu.core_type<tc>, window_params = [{transform_indices = @transform_0, window_bounds = array<i64: 1, 2, 8>}, {transform_indices = @transform_1, window_bounds = array<i64: 1, 2, 8>}, {pipeline_mode = #tpu.pipeline_mode<synchronous>, transform_indices = @transform_2, window_bounds = array<i64: 8, 16>}, {pipeline_mode = #tpu.pipeline_mode<synchronous>, transform_indices = @transform_3, window_bounds = array<i64: 1, 16>}, {pipeline_mode = #tpu.pipeline_mode<synchronous>, transform_indices = @transform_4, window_bounds = array<i64: 16, 3200>}, {pipeline_mode = #tpu.pipeline_mode<synchronous>, transform_indices = @transform_5, window_bounds = array<i64: 1, 3200>}, {pipeline_mode = #tpu.pipeline_mode<synchronous>, transform_indices = @transform_6, window_bounds = array<i64: 8, 16>}, {pipeline_mode = #tpu.pipeline_mode<synchronous>, transform_indices = @transform_7, window_bounds = array<i64: 1, 16>}, {pipeline_mode = #tpu.pipeline_mode<synchronous>, transform_indices = @transform_8, window_bounds = array<i64: 16, 3200>}, {pipeline_mode = #tpu.pipeline_mode<synchronous>, transform_indices = @transform_9, window_bounds = array<i64: 1, 3200>}, {transform_indices = @transform_10, window_bounds = array<i64: 1, 2, 16>}, {transform_indices = @transform_11, window_bounds = array<i64: 1, 2, 16>}]} {
    %c0_i32 = arith.constant 0 : i32
    %0 = arith.cmpi eq, %arg0, %c0_i32 : i32
    %1 = arith.extui %0 : i1 to i32
    %c0_i32_0 = arith.constant 0 : i32
    %2 = arith.cmpi ne, %1, %c0_i32_0 : i32
    scf.if %2 {
      %cst_45 = arith.constant 0.000000e+00 : f32
      %293 = vector.broadcast %cst_45 : f32 to vector<2x128xf32>
      %c0_46 = arith.constant 0 : index
      %c0_47 = arith.constant 0 : index
      %294 = vector.load %arg13[%c0_46, %c0_47] : memref<2x128xf32, #tpu.memory_space<vmem>>, vector<2x128xf32>
      tpu.vector_store %arg13[%c0_46, %c0_47], %293 {strides = array<i32>} : memref<2x128xf32, #tpu.memory_space<vmem>>, vector<2x128xf32>,
      %cst_48 = arith.constant 0.000000e+00 : f32
      %295 = vector.broadcast %cst_48 : f32 to vector<2x128xf32>
      %c0_49 = arith.constant 0 : index
      %c0_50 = arith.constant 0 : index
      %296 = vector.load %arg14[%c0_49, %c0_50] : memref<2x128xf32, #tpu.memory_space<vmem>>, vector<2x128xf32>
      tpu.vector_store %arg14[%c0_49, %c0_50], %295 {strides = array<i32>} : memref<2x128xf32, #tpu.memory_space<vmem>>, vector<2x128xf32>,
    } else {
    }
    %c0 = arith.constant 0 : index
    %c0_1 = arith.constant 0 : index
    %c0_2 = arith.constant 0 : index
    %3 = vector.load %arg1[%c0, %c0_1, %c0_2] : memref<1x2x8xf32, #tpu.memory_space<vmem>>, vector<1x2x8xf32>
    %4 = vector.shape_cast %3 : vector<1x2x8xf32> to vector<2x8xf32>
    %c0_3 = arith.constant 0 : index
    %c0_4 = arith.constant 0 : index
    %c0_5 = arith.constant 0 : index
    %5 = vector.load %arg2[%c0_3, %c0_4, %c0_5] : memref<1x2x8xf32, #tpu.memory_space<vmem>>, vector<1x2x8xf32>
    %6 = vector.shape_cast %5 : vector<1x2x8xf32> to vector<2x8xf32>
    %c0_6 = arith.constant 0 : index
    %c0_7 = arith.constant 0 : index
    %7 = vector.load %arg13[%c0_6, %c0_7] : memref<2x128xf32, #tpu.memory_space<vmem>>, vector<2x128xf32>
    %c0_8 = arith.constant 0 : index
    %c0_9 = arith.constant 0 : index
    %8 = vector.load %arg3[%c0_8, %c0_9] : memref<8x16xf32, #tpu.memory_space<vmem>>, vector<8x16xf32>
    %cst = arith.constant dense<0.000000e+00> : vector<2x16xf32>
    %9 = tpu.matmul %4, %8, %cst {dimension_numbers = #tpu.dot_dimension_numbers<[1], [0], [0], [1], [0, 0, 1, 1], [], []>} : vector<2x8xf32>, vector<8x16xf32>, vector<2x16xf32> -> vector<2x16xf32>
    %c0_10 = arith.constant 0 : index
    %c0_11 = arith.constant 0 : index
    %10 = vector.load %arg4[%c0_10, %c0_11] : memref<1x16xf32, #tpu.memory_space<vmem>>, vector<1x16xf32>
    %11 = vector.broadcast %10 : vector<1x16xf32> to vector<2x16xf32>
    %12 = arith.addf %9, %11 : vector<2x16xf32>
    %cst_12 = arith.constant 0.000000e+00 : f32
    %13 = vector.broadcast %cst_12 : f32 to vector<2x16xf32>
    %14 = arith.maximumf %12, %13 : vector<2x16xf32>
    %c0_13 = arith.constant 0 : index
    %c0_14 = arith.constant 0 : index
    %15 = vector.load %arg5[%c0_13, %c0_14] : memref<16x3200xf32, #tpu.memory_space<vmem>>, vector<16x3200xf32>
    %cst_15 = arith.constant dense<0.000000e+00> : vector<2x3200xf32>
    %16 = tpu.matmul %14, %15, %cst_15 {dimension_numbers = #tpu.dot_dimension_numbers<[1], [0], [0], [1], [0, 0, 1, 1], [], []>} : vector<2x16xf32>, vector<16x3200xf32>, vector<2x3200xf32> -> vector<2x3200xf32>
    %c0_16 = arith.constant 0 : index
    %c0_17 = arith.constant 0 : index
    %17 = vector.load %arg6[%c0_16, %c0_17] : memref<1x3200xf32, #tpu.memory_space<vmem>>, vector<1x3200xf32>
    %18 = vector.broadcast %17 : vector<1x3200xf32> to vector<2x3200xf32>
    %19 = arith.addf %16, %18 : vector<2x3200xf32>
    %cst_18 = arith.constant 0.000000e+00 : f32
    %20 = vector.broadcast %cst_18 : f32 to vector<2x3200xf32>
    %21 = arith.maximumf %19, %20 : vector<2x3200xf32>
    %22 = vector.extract_strided_slice %21 {offsets = [0, 3072], sizes = [2, 128], strides = [1, 1]} : vector<2x3200xf32> to vector<2x128xf32>
    %23 = vector.extract_strided_slice %4 {offsets = [0, 0], sizes = [2, 1], strides = [1, 1]} : vector<2x8xf32> to vector<2x1xf32>
    %24 = vector.extract_strided_slice %21 {offsets = [0, 0], sizes = [2, 128], strides = [1, 1]} : vector<2x3200xf32> to vector<2x128xf32>
    %25 = vector.broadcast %23 : vector<2x1xf32> to vector<2x128xf32>
    %26 = arith.mulf %25, %24 : vector<2x128xf32>
    %27 = arith.addf %22, %26 : vector<2x128xf32>
    %28 = vector.extract_strided_slice %4 {offsets = [0, 1], sizes = [2, 1], strides = [1, 1]} : vector<2x8xf32> to vector<2x1xf32>
    %29 = vector.extract_strided_slice %21 {offsets = [0, 128], sizes = [2, 128], strides = [1, 1]} : vector<2x3200xf32> to vector<2x128xf32>
    %30 = vector.broadcast %28 : vector<2x1xf32> to vector<2x128xf32>
    %31 = arith.mulf %30, %29 : vector<2x128xf32>
    %32 = arith.addf %27, %31 : vector<2x128xf32>
    %33 = vector.extract_strided_slice %4 {offsets = [0, 2], sizes = [2, 1], strides = [1, 1]} : vector<2x8xf32> to vector<2x1xf32>
    %34 = vector.extract_strided_slice %21 {offsets = [0, 256], sizes = [2, 128], strides = [1, 1]} : vector<2x3200xf32> to vector<2x128xf32>
    %35 = vector.broadcast %33 : vector<2x1xf32> to vector<2x128xf32>
    %36 = arith.mulf %35, %34 : vector<2x128xf32>
    %37 = arith.addf %32, %36 : vector<2x128xf32>
    %38 = vector.extract_strided_slice %4 {offsets = [0, 3], sizes = [2, 1], strides = [1, 1]} : vector<2x8xf32> to vector<2x1xf32>
    %39 = vector.extract_strided_slice %21 {offsets = [0, 384], sizes = [2, 128], strides = [1, 1]} : vector<2x3200xf32> to vector<2x128xf32>
    %40 = vector.broadcast %38 : vector<2x1xf32> to vector<2x128xf32>
    %41 = arith.mulf %40, %39 : vector<2x128xf32>
    %42 = arith.addf %37, %41 : vector<2x128xf32>
    %43 = vector.extract_strided_slice %4 {offsets = [0, 4], sizes = [2, 1], strides = [1, 1]} : vector<2x8xf32> to vector<2x1xf32>
    %44 = vector.extract_strided_slice %21 {offsets = [0, 512], sizes = [2, 128], strides = [1, 1]} : vector<2x3200xf32> to vector<2x128xf32>
    %45 = vector.broadcast %43 : vector<2x1xf32> to vector<2x128xf32>
    %46 = arith.mulf %45, %44 : vector<2x128xf32>
    %47 = arith.addf %42, %46 : vector<2x128xf32>
    %48 = vector.extract_strided_slice %4 {offsets = [0, 5], sizes = [2, 1], strides = [1, 1]} : vector<2x8xf32> to vector<2x1xf32>
    %49 = vector.extract_strided_slice %21 {offsets = [0, 640], sizes = [2, 128], strides = [1, 1]} : vector<2x3200xf32> to vector<2x128xf32>
    %50 = vector.broadcast %48 : vector<2x1xf32> to vector<2x128xf32>
    %51 = arith.mulf %50, %49 : vector<2x128xf32>
    %52 = arith.addf %47, %51 : vector<2x128xf32>
    %53 = vector.extract_strided_slice %4 {offsets = [0, 6], sizes = [2, 1], strides = [1, 1]} : vector<2x8xf32> to vector<2x1xf32>
    %54 = vector.extract_strided_slice %21 {offsets = [0, 768], sizes = [2, 128], strides = [1, 1]} : vector<2x3200xf32> to vector<2x128xf32>
    %55 = vector.broadcast %53 : vector<2x1xf32> to vector<2x128xf32>
    %56 = arith.mulf %55, %54 : vector<2x128xf32>
    %57 = arith.addf %52, %56 : vector<2x128xf32>
    %58 = vector.extract_strided_slice %4 {offsets = [0, 7], sizes = [2, 1], strides = [1, 1]} : vector<2x8xf32> to vector<2x1xf32>
    %59 = vector.extract_strided_slice %21 {offsets = [0, 896], sizes = [2, 128], strides = [1, 1]} : vector<2x3200xf32> to vector<2x128xf32>
    %60 = vector.broadcast %58 : vector<2x1xf32> to vector<2x128xf32>
    %61 = arith.mulf %60, %59 : vector<2x128xf32>
    %62 = arith.addf %57, %61 : vector<2x128xf32>
    %63 = vector.extract_strided_slice %7 {offsets = [0, 0], sizes = [2, 1], strides = [1, 1]} : vector<2x128xf32> to vector<2x1xf32>
    %64 = vector.extract_strided_slice %21 {offsets = [0, 1024], sizes = [2, 128], strides = [1, 1]} : vector<2x3200xf32> to vector<2x128xf32>
    %65 = vector.broadcast %63 : vector<2x1xf32> to vector<2x128xf32>
    %66 = arith.mulf %65, %64 : vector<2x128xf32>
    %67 = arith.addf %62, %66 : vector<2x128xf32>
    %68 = vector.extract_strided_slice %7 {offsets = [0, 1], sizes = [2, 1], strides = [1, 1]} : vector<2x128xf32> to vector<2x1xf32>
    %69 = vector.extract_strided_slice %21 {offsets = [0, 1152], sizes = [2, 128], strides = [1, 1]} : vector<2x3200xf32> to vector<2x128xf32>
    %70 = vector.broadcast %68 : vector<2x1xf32> to vector<2x128xf32>
    %71 = arith.mulf %70, %69 : vector<2x128xf32>
    %72 = arith.addf %67, %71 : vector<2x128xf32>
    %73 = vector.extract_strided_slice %7 {offsets = [0, 2], sizes = [2, 1], strides = [1, 1]} : vector<2x128xf32> to vector<2x1xf32>
    %74 = vector.extract_strided_slice %21 {offsets = [0, 1280], sizes = [2, 128], strides = [1, 1]} : vector<2x3200xf32> to vector<2x128xf32>
    %75 = vector.broadcast %73 : vector<2x1xf32> to vector<2x128xf32>
    %76 = arith.mulf %75, %74 : vector<2x128xf32>
    %77 = arith.addf %72, %76 : vector<2x128xf32>
    %78 = vector.extract_strided_slice %7 {offsets = [0, 3], sizes = [2, 1], strides = [1, 1]} : vector<2x128xf32> to vector<2x1xf32>
    %79 = vector.extract_strided_slice %21 {offsets = [0, 1408], sizes = [2, 128], strides = [1, 1]} : vector<2x3200xf32> to vector<2x128xf32>
    %80 = vector.broadcast %78 : vector<2x1xf32> to vector<2x128xf32>
    %81 = arith.mulf %80, %79 : vector<2x128xf32>
    %82 = arith.addf %77, %81 : vector<2x128xf32>
    %83 = vector.extract_strided_slice %7 {offsets = [0, 4], sizes = [2, 1], strides = [1, 1]} : vector<2x128xf32> to vector<2x1xf32>
    %84 = vector.extract_strided_slice %21 {offsets = [0, 1536], sizes = [2, 128], strides = [1, 1]} : vector<2x3200xf32> to vector<2x128xf32>
    %85 = vector.broadcast %83 : vector<2x1xf32> to vector<2x128xf32>
    %86 = arith.mulf %85, %84 : vector<2x128xf32>
    %87 = arith.addf %82, %86 : vector<2x128xf32>
    %88 = vector.extract_strided_slice %7 {offsets = [0, 5], sizes = [2, 1], strides = [1, 1]} : vector<2x128xf32> to vector<2x1xf32>
    %89 = vector.extract_strided_slice %21 {offsets = [0, 1664], sizes = [2, 128], strides = [1, 1]} : vector<2x3200xf32> to vector<2x128xf32>
    %90 = vector.broadcast %88 : vector<2x1xf32> to vector<2x128xf32>
    %91 = arith.mulf %90, %89 : vector<2x128xf32>
    %92 = arith.addf %87, %91 : vector<2x128xf32>
    %93 = vector.extract_strided_slice %7 {offsets = [0, 6], sizes = [2, 1], strides = [1, 1]} : vector<2x128xf32> to vector<2x1xf32>
    %94 = vector.extract_strided_slice %21 {offsets = [0, 1792], sizes = [2, 128], strides = [1, 1]} : vector<2x3200xf32> to vector<2x128xf32>
    %95 = vector.broadcast %93 : vector<2x1xf32> to vector<2x128xf32>
    %96 = arith.mulf %95, %94 : vector<2x128xf32>
    %97 = arith.addf %92, %96 : vector<2x128xf32>
    %98 = vector.extract_strided_slice %7 {offsets = [0, 7], sizes = [2, 1], strides = [1, 1]} : vector<2x128xf32> to vector<2x1xf32>
    %99 = vector.extract_strided_slice %21 {offsets = [0, 1920], sizes = [2, 128], strides = [1, 1]} : vector<2x3200xf32> to vector<2x128xf32>
    %100 = vector.broadcast %98 : vector<2x1xf32> to vector<2x128xf32>
    %101 = arith.mulf %100, %99 : vector<2x128xf32>
    %102 = arith.addf %97, %101 : vector<2x128xf32>
    %103 = vector.extract_strided_slice %7 {offsets = [0, 8], sizes = [2, 1], strides = [1, 1]} : vector<2x128xf32> to vector<2x1xf32>
    %104 = vector.extract_strided_slice %21 {offsets = [0, 2048], sizes = [2, 128], strides = [1, 1]} : vector<2x3200xf32> to vector<2x128xf32>
    %105 = vector.broadcast %103 : vector<2x1xf32> to vector<2x128xf32>
    %106 = arith.mulf %105, %104 : vector<2x128xf32>
    %107 = arith.addf %102, %106 : vector<2x128xf32>
    %108 = vector.extract_strided_slice %7 {offsets = [0, 9], sizes = [2, 1], strides = [1, 1]} : vector<2x128xf32> to vector<2x1xf32>
    %109 = vector.extract_strided_slice %21 {offsets = [0, 2176], sizes = [2, 128], strides = [1, 1]} : vector<2x3200xf32> to vector<2x128xf32>
    %110 = vector.broadcast %108 : vector<2x1xf32> to vector<2x128xf32>
    %111 = arith.mulf %110, %109 : vector<2x128xf32>
    %112 = arith.addf %107, %111 : vector<2x128xf32>
    %113 = vector.extract_strided_slice %7 {offsets = [0, 10], sizes = [2, 1], strides = [1, 1]} : vector<2x128xf32> to vector<2x1xf32>
    %114 = vector.extract_strided_slice %21 {offsets = [0, 2304], sizes = [2, 128], strides = [1, 1]} : vector<2x3200xf32> to vector<2x128xf32>
    %115 = vector.broadcast %113 : vector<2x1xf32> to vector<2x128xf32>
    %116 = arith.mulf %115, %114 : vector<2x128xf32>
    %117 = arith.addf %112, %116 : vector<2x128xf32>
    %118 = vector.extract_strided_slice %7 {offsets = [0, 11], sizes = [2, 1], strides = [1, 1]} : vector<2x128xf32> to vector<2x1xf32>
    %119 = vector.extract_strided_slice %21 {offsets = [0, 2432], sizes = [2, 128], strides = [1, 1]} : vector<2x3200xf32> to vector<2x128xf32>
    %120 = vector.broadcast %118 : vector<2x1xf32> to vector<2x128xf32>
    %121 = arith.mulf %120, %119 : vector<2x128xf32>
    %122 = arith.addf %117, %121 : vector<2x128xf32>
    %123 = vector.extract_strided_slice %7 {offsets = [0, 12], sizes = [2, 1], strides = [1, 1]} : vector<2x128xf32> to vector<2x1xf32>
    %124 = vector.extract_strided_slice %21 {offsets = [0, 2560], sizes = [2, 128], strides = [1, 1]} : vector<2x3200xf32> to vector<2x128xf32>
    %125 = vector.broadcast %123 : vector<2x1xf32> to vector<2x128xf32>
    %126 = arith.mulf %125, %124 : vector<2x128xf32>
    %127 = arith.addf %122, %126 : vector<2x128xf32>
    %128 = vector.extract_strided_slice %7 {offsets = [0, 13], sizes = [2, 1], strides = [1, 1]} : vector<2x128xf32> to vector<2x1xf32>
    %129 = vector.extract_strided_slice %21 {offsets = [0, 2688], sizes = [2, 128], strides = [1, 1]} : vector<2x3200xf32> to vector<2x128xf32>
    %130 = vector.broadcast %128 : vector<2x1xf32> to vector<2x128xf32>
    %131 = arith.mulf %130, %129 : vector<2x128xf32>
    %132 = arith.addf %127, %131 : vector<2x128xf32>
    %133 = vector.extract_strided_slice %7 {offsets = [0, 14], sizes = [2, 1], strides = [1, 1]} : vector<2x128xf32> to vector<2x1xf32>
    %134 = vector.extract_strided_slice %21 {offsets = [0, 2816], sizes = [2, 128], strides = [1, 1]} : vector<2x3200xf32> to vector<2x128xf32>
    %135 = vector.broadcast %133 : vector<2x1xf32> to vector<2x128xf32>
    %136 = arith.mulf %135, %134 : vector<2x128xf32>
    %137 = arith.addf %132, %136 : vector<2x128xf32>
    %138 = vector.extract_strided_slice %7 {offsets = [0, 15], sizes = [2, 1], strides = [1, 1]} : vector<2x128xf32> to vector<2x1xf32>
    %139 = vector.extract_strided_slice %21 {offsets = [0, 2944], sizes = [2, 128], strides = [1, 1]} : vector<2x3200xf32> to vector<2x128xf32>
    %140 = vector.broadcast %138 : vector<2x1xf32> to vector<2x128xf32>
    %141 = arith.mulf %140, %139 : vector<2x128xf32>
    %142 = arith.addf %137, %141 : vector<2x128xf32>
    %cst_19 = arith.constant 0.000000e+00 : f32
    %143 = vector.broadcast %cst_19 : f32 to vector<2x128xf32>
    %144 = arith.maximumf %142, %143 : vector<2x128xf32>
    %c0_20 = arith.constant 0 : index
    %c0_21 = arith.constant 0 : index
    %145 = vector.load %arg14[%c0_20, %c0_21] : memref<2x128xf32, #tpu.memory_space<vmem>>, vector<2x128xf32>
    %c0_22 = arith.constant 0 : index
    %c0_23 = arith.constant 0 : index
    %146 = vector.load %arg7[%c0_22, %c0_23] : memref<8x16xf32, #tpu.memory_space<vmem>>, vector<8x16xf32>
    %cst_24 = arith.constant dense<0.000000e+00> : vector<2x16xf32>
    %147 = tpu.matmul %6, %146, %cst_24 {dimension_numbers = #tpu.dot_dimension_numbers<[1], [0], [0], [1], [0, 0, 1, 1], [], []>} : vector<2x8xf32>, vector<8x16xf32>, vector<2x16xf32> -> vector<2x16xf32>
    %c0_25 = arith.constant 0 : index
    %c0_26 = arith.constant 0 : index
    %148 = vector.load %arg8[%c0_25, %c0_26] : memref<1x16xf32, #tpu.memory_space<vmem>>, vector<1x16xf32>
    %149 = vector.broadcast %148 : vector<1x16xf32> to vector<2x16xf32>
    %150 = arith.addf %147, %149 : vector<2x16xf32>
    %cst_27 = arith.constant 0.000000e+00 : f32
    %151 = vector.broadcast %cst_27 : f32 to vector<2x16xf32>
    %152 = arith.maximumf %150, %151 : vector<2x16xf32>
    %c0_28 = arith.constant 0 : index
    %c0_29 = arith.constant 0 : index
    %153 = vector.load %arg9[%c0_28, %c0_29] : memref<16x3200xf32, #tpu.memory_space<vmem>>, vector<16x3200xf32>
    %cst_30 = arith.constant dense<0.000000e+00> : vector<2x3200xf32>
    %154 = tpu.matmul %152, %153, %cst_30 {dimension_numbers = #tpu.dot_dimension_numbers<[1], [0], [0], [1], [0, 0, 1, 1], [], []>} : vector<2x16xf32>, vector<16x3200xf32>, vector<2x3200xf32> -> vector<2x3200xf32>
    %c0_31 = arith.constant 0 : index
    %c0_32 = arith.constant 0 : index
    %155 = vector.load %arg10[%c0_31, %c0_32] : memref<1x3200xf32, #tpu.memory_space<vmem>>, vector<1x3200xf32>
    %156 = vector.broadcast %155 : vector<1x3200xf32> to vector<2x3200xf32>
    %157 = arith.addf %154, %156 : vector<2x3200xf32>
    %cst_33 = arith.constant 0.000000e+00 : f32
    %158 = vector.broadcast %cst_33 : f32 to vector<2x3200xf32>
    %159 = arith.maximumf %157, %158 : vector<2x3200xf32>
    %160 = vector.extract_strided_slice %159 {offsets = [0, 3072], sizes = [2, 128], strides = [1, 1]} : vector<2x3200xf32> to vector<2x128xf32>
    %161 = vector.extract_strided_slice %6 {offsets = [0, 0], sizes = [2, 1], strides = [1, 1]} : vector<2x8xf32> to vector<2x1xf32>
    %162 = vector.extract_strided_slice %159 {offsets = [0, 0], sizes = [2, 128], strides = [1, 1]} : vector<2x3200xf32> to vector<2x128xf32>
    %163 = vector.broadcast %161 : vector<2x1xf32> to vector<2x128xf32>
    %164 = arith.mulf %163, %162 : vector<2x128xf32>
    %165 = arith.addf %160, %164 : vector<2x128xf32>
    %166 = vector.extract_strided_slice %6 {offsets = [0, 1], sizes = [2, 1], strides = [1, 1]} : vector<2x8xf32> to vector<2x1xf32>
    %167 = vector.extract_strided_slice %159 {offsets = [0, 128], sizes = [2, 128], strides = [1, 1]} : vector<2x3200xf32> to vector<2x128xf32>
    %168 = vector.broadcast %166 : vector<2x1xf32> to vector<2x128xf32>
    %169 = arith.mulf %168, %167 : vector<2x128xf32>
    %170 = arith.addf %165, %169 : vector<2x128xf32>
    %171 = vector.extract_strided_slice %6 {offsets = [0, 2], sizes = [2, 1], strides = [1, 1]} : vector<2x8xf32> to vector<2x1xf32>
    %172 = vector.extract_strided_slice %159 {offsets = [0, 256], sizes = [2, 128], strides = [1, 1]} : vector<2x3200xf32> to vector<2x128xf32>
    %173 = vector.broadcast %171 : vector<2x1xf32> to vector<2x128xf32>
    %174 = arith.mulf %173, %172 : vector<2x128xf32>
    %175 = arith.addf %170, %174 : vector<2x128xf32>
    %176 = vector.extract_strided_slice %6 {offsets = [0, 3], sizes = [2, 1], strides = [1, 1]} : vector<2x8xf32> to vector<2x1xf32>
    %177 = vector.extract_strided_slice %159 {offsets = [0, 384], sizes = [2, 128], strides = [1, 1]} : vector<2x3200xf32> to vector<2x128xf32>
    %178 = vector.broadcast %176 : vector<2x1xf32> to vector<2x128xf32>
    %179 = arith.mulf %178, %177 : vector<2x128xf32>
    %180 = arith.addf %175, %179 : vector<2x128xf32>
    %181 = vector.extract_strided_slice %6 {offsets = [0, 4], sizes = [2, 1], strides = [1, 1]} : vector<2x8xf32> to vector<2x1xf32>
    %182 = vector.extract_strided_slice %159 {offsets = [0, 512], sizes = [2, 128], strides = [1, 1]} : vector<2x3200xf32> to vector<2x128xf32>
    %183 = vector.broadcast %181 : vector<2x1xf32> to vector<2x128xf32>
    %184 = arith.mulf %183, %182 : vector<2x128xf32>
    %185 = arith.addf %180, %184 : vector<2x128xf32>
    %186 = vector.extract_strided_slice %6 {offsets = [0, 5], sizes = [2, 1], strides = [1, 1]} : vector<2x8xf32> to vector<2x1xf32>
    %187 = vector.extract_strided_slice %159 {offsets = [0, 640], sizes = [2, 128], strides = [1, 1]} : vector<2x3200xf32> to vector<2x128xf32>
    %188 = vector.broadcast %186 : vector<2x1xf32> to vector<2x128xf32>
    %189 = arith.mulf %188, %187 : vector<2x128xf32>
    %190 = arith.addf %185, %189 : vector<2x128xf32>
    %191 = vector.extract_strided_slice %6 {offsets = [0, 6], sizes = [2, 1], strides = [1, 1]} : vector<2x8xf32> to vector<2x1xf32>
    %192 = vector.extract_strided_slice %159 {offsets = [0, 768], sizes = [2, 128], strides = [1, 1]} : vector<2x3200xf32> to vector<2x128xf32>
    %193 = vector.broadcast %191 : vector<2x1xf32> to vector<2x128xf32>
    %194 = arith.mulf %193, %192 : vector<2x128xf32>
    %195 = arith.addf %190, %194 : vector<2x128xf32>
    %196 = vector.extract_strided_slice %6 {offsets = [0, 7], sizes = [2, 1], strides = [1, 1]} : vector<2x8xf32> to vector<2x1xf32>
    %197 = vector.extract_strided_slice %159 {offsets = [0, 896], sizes = [2, 128], strides = [1, 1]} : vector<2x3200xf32> to vector<2x128xf32>
    %198 = vector.broadcast %196 : vector<2x1xf32> to vector<2x128xf32>
    %199 = arith.mulf %198, %197 : vector<2x128xf32>
    %200 = arith.addf %195, %199 : vector<2x128xf32>
    %201 = vector.extract_strided_slice %145 {offsets = [0, 0], sizes = [2, 1], strides = [1, 1]} : vector<2x128xf32> to vector<2x1xf32>
    %202 = vector.extract_strided_slice %159 {offsets = [0, 1024], sizes = [2, 128], strides = [1, 1]} : vector<2x3200xf32> to vector<2x128xf32>
    %203 = vector.broadcast %201 : vector<2x1xf32> to vector<2x128xf32>
    %204 = arith.mulf %203, %202 : vector<2x128xf32>
    %205 = arith.addf %200, %204 : vector<2x128xf32>
    %206 = vector.extract_strided_slice %145 {offsets = [0, 1], sizes = [2, 1], strides = [1, 1]} : vector<2x128xf32> to vector<2x1xf32>
    %207 = vector.extract_strided_slice %159 {offsets = [0, 1152], sizes = [2, 128], strides = [1, 1]} : vector<2x3200xf32> to vector<2x128xf32>
    %208 = vector.broadcast %206 : vector<2x1xf32> to vector<2x128xf32>
    %209 = arith.mulf %208, %207 : vector<2x128xf32>
    %210 = arith.addf %205, %209 : vector<2x128xf32>
    %211 = vector.extract_strided_slice %145 {offsets = [0, 2], sizes = [2, 1], strides = [1, 1]} : vector<2x128xf32> to vector<2x1xf32>
    %212 = vector.extract_strided_slice %159 {offsets = [0, 1280], sizes = [2, 128], strides = [1, 1]} : vector<2x3200xf32> to vector<2x128xf32>
    %213 = vector.broadcast %211 : vector<2x1xf32> to vector<2x128xf32>
    %214 = arith.mulf %213, %212 : vector<2x128xf32>
    %215 = arith.addf %210, %214 : vector<2x128xf32>
    %216 = vector.extract_strided_slice %145 {offsets = [0, 3], sizes = [2, 1], strides = [1, 1]} : vector<2x128xf32> to vector<2x1xf32>
    %217 = vector.extract_strided_slice %159 {offsets = [0, 1408], sizes = [2, 128], strides = [1, 1]} : vector<2x3200xf32> to vector<2x128xf32>
    %218 = vector.broadcast %216 : vector<2x1xf32> to vector<2x128xf32>
    %219 = arith.mulf %218, %217 : vector<2x128xf32>
    %220 = arith.addf %215, %219 : vector<2x128xf32>
    %221 = vector.extract_strided_slice %145 {offsets = [0, 4], sizes = [2, 1], strides = [1, 1]} : vector<2x128xf32> to vector<2x1xf32>
    %222 = vector.extract_strided_slice %159 {offsets = [0, 1536], sizes = [2, 128], strides = [1, 1]} : vector<2x3200xf32> to vector<2x128xf32>
    %223 = vector.broadcast %221 : vector<2x1xf32> to vector<2x128xf32>
    %224 = arith.mulf %223, %222 : vector<2x128xf32>
    %225 = arith.addf %220, %224 : vector<2x128xf32>
    %226 = vector.extract_strided_slice %145 {offsets = [0, 5], sizes = [2, 1], strides = [1, 1]} : vector<2x128xf32> to vector<2x1xf32>
    %227 = vector.extract_strided_slice %159 {offsets = [0, 1664], sizes = [2, 128], strides = [1, 1]} : vector<2x3200xf32> to vector<2x128xf32>
    %228 = vector.broadcast %226 : vector<2x1xf32> to vector<2x128xf32>
    %229 = arith.mulf %228, %227 : vector<2x128xf32>
    %230 = arith.addf %225, %229 : vector<2x128xf32>
    %231 = vector.extract_strided_slice %145 {offsets = [0, 6], sizes = [2, 1], strides = [1, 1]} : vector<2x128xf32> to vector<2x1xf32>
    %232 = vector.extract_strided_slice %159 {offsets = [0, 1792], sizes = [2, 128], strides = [1, 1]} : vector<2x3200xf32> to vector<2x128xf32>
    %233 = vector.broadcast %231 : vector<2x1xf32> to vector<2x128xf32>
    %234 = arith.mulf %233, %232 : vector<2x128xf32>
    %235 = arith.addf %230, %234 : vector<2x128xf32>
    %236 = vector.extract_strided_slice %145 {offsets = [0, 7], sizes = [2, 1], strides = [1, 1]} : vector<2x128xf32> to vector<2x1xf32>
    %237 = vector.extract_strided_slice %159 {offsets = [0, 1920], sizes = [2, 128], strides = [1, 1]} : vector<2x3200xf32> to vector<2x128xf32>
    %238 = vector.broadcast %236 : vector<2x1xf32> to vector<2x128xf32>
    %239 = arith.mulf %238, %237 : vector<2x128xf32>
    %240 = arith.addf %235, %239 : vector<2x128xf32>
    %241 = vector.extract_strided_slice %145 {offsets = [0, 8], sizes = [2, 1], strides = [1, 1]} : vector<2x128xf32> to vector<2x1xf32>
    %242 = vector.extract_strided_slice %159 {offsets = [0, 2048], sizes = [2, 128], strides = [1, 1]} : vector<2x3200xf32> to vector<2x128xf32>
    %243 = vector.broadcast %241 : vector<2x1xf32> to vector<2x128xf32>
    %244 = arith.mulf %243, %242 : vector<2x128xf32>
    %245 = arith.addf %240, %244 : vector<2x128xf32>
    %246 = vector.extract_strided_slice %145 {offsets = [0, 9], sizes = [2, 1], strides = [1, 1]} : vector<2x128xf32> to vector<2x1xf32>
    %247 = vector.extract_strided_slice %159 {offsets = [0, 2176], sizes = [2, 128], strides = [1, 1]} : vector<2x3200xf32> to vector<2x128xf32>
    %248 = vector.broadcast %246 : vector<2x1xf32> to vector<2x128xf32>
    %249 = arith.mulf %248, %247 : vector<2x128xf32>
    %250 = arith.addf %245, %249 : vector<2x128xf32>
    %251 = vector.extract_strided_slice %145 {offsets = [0, 10], sizes = [2, 1], strides = [1, 1]} : vector<2x128xf32> to vector<2x1xf32>
    %252 = vector.extract_strided_slice %159 {offsets = [0, 2304], sizes = [2, 128], strides = [1, 1]} : vector<2x3200xf32> to vector<2x128xf32>
    %253 = vector.broadcast %251 : vector<2x1xf32> to vector<2x128xf32>
    %254 = arith.mulf %253, %252 : vector<2x128xf32>
    %255 = arith.addf %250, %254 : vector<2x128xf32>
    %256 = vector.extract_strided_slice %145 {offsets = [0, 11], sizes = [2, 1], strides = [1, 1]} : vector<2x128xf32> to vector<2x1xf32>
    %257 = vector.extract_strided_slice %159 {offsets = [0, 2432], sizes = [2, 128], strides = [1, 1]} : vector<2x3200xf32> to vector<2x128xf32>
    %258 = vector.broadcast %256 : vector<2x1xf32> to vector<2x128xf32>
    %259 = arith.mulf %258, %257 : vector<2x128xf32>
    %260 = arith.addf %255, %259 : vector<2x128xf32>
    %261 = vector.extract_strided_slice %145 {offsets = [0, 12], sizes = [2, 1], strides = [1, 1]} : vector<2x128xf32> to vector<2x1xf32>
    %262 = vector.extract_strided_slice %159 {offsets = [0, 2560], sizes = [2, 128], strides = [1, 1]} : vector<2x3200xf32> to vector<2x128xf32>
    %263 = vector.broadcast %261 : vector<2x1xf32> to vector<2x128xf32>
    %264 = arith.mulf %263, %262 : vector<2x128xf32>
    %265 = arith.addf %260, %264 : vector<2x128xf32>
    %266 = vector.extract_strided_slice %145 {offsets = [0, 13], sizes = [2, 1], strides = [1, 1]} : vector<2x128xf32> to vector<2x1xf32>
    %267 = vector.extract_strided_slice %159 {offsets = [0, 2688], sizes = [2, 128], strides = [1, 1]} : vector<2x3200xf32> to vector<2x128xf32>
    %268 = vector.broadcast %266 : vector<2x1xf32> to vector<2x128xf32>
    %269 = arith.mulf %268, %267 : vector<2x128xf32>
    %270 = arith.addf %265, %269 : vector<2x128xf32>
    %271 = vector.extract_strided_slice %145 {offsets = [0, 14], sizes = [2, 1], strides = [1, 1]} : vector<2x128xf32> to vector<2x1xf32>
    %272 = vector.extract_strided_slice %159 {offsets = [0, 2816], sizes = [2, 128], strides = [1, 1]} : vector<2x3200xf32> to vector<2x128xf32>
    %273 = vector.broadcast %271 : vector<2x1xf32> to vector<2x128xf32>
    %274 = arith.mulf %273, %272 : vector<2x128xf32>
    %275 = arith.addf %270, %274 : vector<2x128xf32>
    %276 = vector.extract_strided_slice %145 {offsets = [0, 15], sizes = [2, 1], strides = [1, 1]} : vector<2x128xf32> to vector<2x1xf32>
    %277 = vector.extract_strided_slice %159 {offsets = [0, 2944], sizes = [2, 128], strides = [1, 1]} : vector<2x3200xf32> to vector<2x128xf32>
    %278 = vector.broadcast %276 : vector<2x1xf32> to vector<2x128xf32>
    %279 = arith.mulf %278, %277 : vector<2x128xf32>
    %280 = arith.addf %275, %279 : vector<2x128xf32>
    %cst_34 = arith.constant 0.000000e+00 : f32
    %281 = vector.broadcast %cst_34 : f32 to vector<2x128xf32>
    %282 = arith.maximumf %280, %281 : vector<2x128xf32>
    %c0_35 = arith.constant 0 : index
    %c0_36 = arith.constant 0 : index
    %283 = vector.load %arg13[%c0_35, %c0_36] : memref<2x128xf32, #tpu.memory_space<vmem>>, vector<2x128xf32>
    tpu.vector_store %arg13[%c0_35, %c0_36], %144 {strides = array<i32>} : memref<2x128xf32, #tpu.memory_space<vmem>>, vector<2x128xf32>,
    %c0_37 = arith.constant 0 : index
    %c0_38 = arith.constant 0 : index
    %284 = vector.load %arg14[%c0_37, %c0_38] : memref<2x128xf32, #tpu.memory_space<vmem>>, vector<2x128xf32>
    tpu.vector_store %arg14[%c0_37, %c0_38], %282 {strides = array<i32>} : memref<2x128xf32, #tpu.memory_space<vmem>>, vector<2x128xf32>,
    %285 = vector.extract_strided_slice %144 {offsets = [0, 0], sizes = [2, 16], strides = [1, 1]} : vector<2x128xf32> to vector<2x16xf32>
    %c0_39 = arith.constant 0 : index
    %c0_40 = arith.constant 0 : index
    %c0_41 = arith.constant 0 : index
    %286 = vector.load %arg11[%c0_39, %c0_40, %c0_41] : memref<1x2x16xf32, #tpu.memory_space<vmem>>, vector<1x2x16xf32>
    %287 = vector.shape_cast %286 : vector<1x2x16xf32> to vector<2x16xf32>
    %288 = vector.shape_cast %285 : vector<2x16xf32> to vector<1x2x16xf32>
    tpu.vector_store %arg11[%c0_39, %c0_40, %c0_41], %288 {strides = array<i32>} : memref<1x2x16xf32, #tpu.memory_space<vmem>>, vector<1x2x16xf32>,
    %289 = vector.extract_strided_slice %282 {offsets = [0, 0], sizes = [2, 16], strides = [1, 1]} : vector<2x128xf32> to vector<2x16xf32>
    %c0_42 = arith.constant 0 : index
    %c0_43 = arith.constant 0 : index
    %c0_44 = arith.constant 0 : index
    %290 = vector.load %arg12[%c0_42, %c0_43, %c0_44] : memref<1x2x16xf32, #tpu.memory_space<vmem>>, vector<1x2x16xf32>
    %291 = vector.shape_cast %290 : vector<1x2x16xf32> to vector<2x16xf32>
    %292 = vector.shape_cast %289 : vector<2x16xf32> to vector<1x2x16xf32>
    tpu.vector_store %arg12[%c0_42, %c0_43, %c0_44], %292 {strides = array<i32>} : memref<1x2x16xf32, #tpu.memory_space<vmem>>, vector<1x2x16xf32>,
    return
  }
  func.func @transform_0(%arg0: i32) -> (i32, i32, i32) {
    %c0_i32 = arith.constant 0 : i32
    %c0_i32_0 = arith.constant 0 : i32
    %c0_i32_1 = arith.constant 0 : i32
    return %arg0, %c0_i32, %c0_i32_0 : i32, i32, i32
  }
  func.func @transform_1(%arg0: i32) -> (i32, i32, i32) {
    %c7_i32 = arith.constant 7 : i32
    %0 = arith.subi %c7_i32, %arg0 : i32
    %c0_i32 = arith.constant 0 : i32
    %c0_i32_0 = arith.constant 0 : i32
    %c0_i32_1 = arith.constant 0 : i32
    return %0, %c0_i32, %c0_i32_0 : i32, i32, i32
  }
  func.func @transform_2(%arg0: i32) -> (i32, i32) {
    %c0_i32 = arith.constant 0 : i32
    %c0_i32_0 = arith.constant 0 : i32
    %c0_i32_1 = arith.constant 0 : i32
    return %c0_i32, %c0_i32_0 : i32, i32
  }
  func.func @transform_3(%arg0: i32) -> (i32, i32) {
    %c0_i32 = arith.constant 0 : i32
    %c0_i32_0 = arith.constant 0 : i32
    %c0_i32_1 = arith.constant 0 : i32
    return %c0_i32, %c0_i32_0 : i32, i32
  }
  func.func @transform_4(%arg0: i32) -> (i32, i32) {
    %c0_i32 = arith.constant 0 : i32
    %c0_i32_0 = arith.constant 0 : i32
    %c0_i32_1 = arith.constant 0 : i32
    return %c0_i32, %c0_i32_0 : i32, i32
  }
  func.func @transform_5(%arg0: i32) -> (i32, i32) {
    %c0_i32 = arith.constant 0 : i32
    %c0_i32_0 = arith.constant 0 : i32
    %c0_i32_1 = arith.constant 0 : i32
    return %c0_i32, %c0_i32_0 : i32, i32
  }
  func.func @transform_6(%arg0: i32) -> (i32, i32) {
    %c0_i32 = arith.constant 0 : i32
    %c0_i32_0 = arith.constant 0 : i32
    %c0_i32_1 = arith.constant 0 : i32
    return %c0_i32, %c0_i32_0 : i32, i32
  }
  func.func @transform_7(%arg0: i32) -> (i32, i32) {
    %c0_i32 = arith.constant 0 : i32
    %c0_i32_0 = arith.constant 0 : i32
    %c0_i32_1 = arith.constant 0 : i32
    return %c0_i32, %c0_i32_0 : i32, i32
  }
  func.func @transform_8(%arg0: i32) -> (i32, i32) {
    %c0_i32 = arith.constant 0 : i32
    %c0_i32_0 = arith.constant 0 : i32
    %c0_i32_1 = arith.constant 0 : i32
    return %c0_i32, %c0_i32_0 : i32, i32
  }
  func.func @transform_9(%arg0: i32) -> (i32, i32) {
    %c0_i32 = arith.constant 0 : i32
    %c0_i32_0 = arith.constant 0 : i32
    %c0_i32_1 = arith.constant 0 : i32
    return %c0_i32, %c0_i32_0 : i32, i32
  }
  func.func @transform_10(%arg0: i32) -> (i32, i32, i32) {
    %c0_i32 = arith.constant 0 : i32
    %c0_i32_0 = arith.constant 0 : i32
    %c0_i32_1 = arith.constant 0 : i32
    return %arg0, %c0_i32, %c0_i32_0 : i32, i32, i32
  }
  func.func @transform_11(%arg0: i32) -> (i32, i32, i32) {
    %c7_i32 = arith.constant 7 : i32
    %0 = arith.subi %c7_i32, %arg0 : i32
    %c0_i32 = arith.constant 0 : i32
    %c0_i32_0 = arith.constant 0 : i32
    %c0_i32_1 = arith.constant 0 : i32
    return %0, %c0_i32, %c0_i32_0 : i32, i32, i32
  }
}

</mosaic_0001>

<bundles_post_ra>
// kernel: birnnvp_forward.1
= control target key start
LH: loop header
LB: loop body
LE: loop exit
PB: predicated region body
PF: predicated region fallthrough
CT: control target
= control target key end

     0   :  { %s4732_s0 = inlined_call_operand.vmem [shape: f32[8,2,8], index: 0, kind: input, shape index: {}, may-alias: {0,1}]   ;;  %s4733_s1 = inlined_call_operand.vmem [shape: f32[8,2,8], index: 1, kind: input, shape index: {}, may-alias: {0,1}]   ;;  %s4734_s2 = inlined_call_operand.hbm [shape: f32[8,16], index: 2, kind: input, shape index: {}]   ;;  %s4735_s3 = inlined_call_operand.hbm [shape: f32[1,16], index: 3, kind: input, shape index: {}]   ;;  %s4736_s4 = inlined_call_operand.hbm [shape: f32[16,3200], index: 4, kind: input, shape index: {}]   ;;  %s4737_s5 = inlined_call_operand.vmem [shape: f32[1,3200], index: 5, kind: input, shape index: {}]   ;;  %s4738_s6 = inlined_call_operand.hbm [shape: f32[8,16], index: 6, kind: input, shape index: {}]   ;;  %s4739_s7 = inlined_call_operand.hbm [shape: f32[1,16], index: 7, kind: input, shape index: {}]   ;;  %s4740_s8 = inlined_call_operand.hbm [shape: f32[16,3200], index: 8, kind: input, shape index: {}]   ;;  %s4741_s9 = inlined_call_operand.vmem [shape: f32[1,3200], index: 9, kind: input, shape index: {}]   ;;  %s4742_s10 = inlined_call_operand.vmem [shape: f32[8,2,16], index: 10, kind: output, shape index: {0}]   ;;  %s4743_s11 = inlined_call_operand.vmem [shape: f32[8,2,16], index: 11, kind: output, shape index: {1}]  }
   0x1   :  { %4749 = sst [smem:[#allocation46_spill]] %s4734_s2 }
   0x2   :  { %4750 = sst [smem:[#allocation47_spill]] %s4735_s3 }
   0x3   :  { %17 = vsyncpa [#allocation5], 0 }
   0x4   :  { %18 = vsyncpa [#allocation7], 0 }
   0x5   :  { %19 = vsyncpa [#allocation10], 0 }
   0x6   :  { %20 = vsyncpa [#allocation13], 0  ;;  %s4007_s17 = smov 0  }
   0x7 LB: > { %s3919_s18 = smov [#allocation6]   ;;  %s4013_s20 = sadd.s32 4294967295, %s3917_s17   ;;  %s3917_s17 = sphi %s4007_s17, %s26_s17  }
   0x8   : > { %s331_s19 = sshll.u32 %s3919_s18, 4  ;;  %p3402_p0 = scmp.ge.s32.totalorder %s3917_s17, 1  ;;  %s4019_s19 = int_to_ptr.vmem [resolvable:$true] %s331_s19 }
   0x9   : > { %p307_p1 = scmp.lt.s32.totalorder %s3917_s17, 9  ;;  %p4744_p3 = scmp.eq.s32.totalorder %s4013_s20, 0 }
   0xa   : > { %s3920_s22 = smov [#allocation9]   ;;  %s3921_s24 = smov [#allocation4]  }
   0xb   : > { %p4021_p4 = pnand %p3402_p0, %p307_p1  ;;  %s358_s23 = sshll.u32 %s3920_s22, 4  ;;  %s4027_s23 = int_to_ptr.vmem [resolvable:$true] %s358_s23 }
   0xc   : > { %s320_s25 = sshll.u32 %s3921_s24, 4  ;;  %s3922_s27 = smov [#allocation8]   ;;  %s4035_s25 = int_to_ptr.vmem [resolvable:$true] %s320_s25 }
   0xd   : > { %s4751_s21 = scalar_select %p4021_p4, 1, 0 }
   0xe   : > { %p3616_p5 = pneg %p4021_p4  ;;  %s341_s28 = sshll.u32 %s3922_s27, 4  ;;  %s4037_s28 = int_to_ptr.vmem [resolvable:$true] %s341_s28 }
   0xf   : > { %s4753_s3 = sld [smem:[#allocation47_spill]] }
  0x10   : > { %p4031_p6 = pnand %p4744_p3, %p3616_p5 }
  0x12   : > { %p4047_p8 = pneg %p4031_p6 }
  0x15   : > { %s3727_s12 = scalar_lea.hbm %s4753_s3, 16 }
  0x16   : > { %p3728_p7 = scmp.ne.s32.totalorder %s4753_s3, %s3727_s12  ;;  %p3734_p11 = scmp.lt.u32.totalorder %s3727_s12, %s4753_s3 }
  0x18   : > { %p3730_p9 = pnand %p4047_p8, %p3728_p7 }
  0x1a   : > { %p3731_p10 = pneg %p3730_p9 }
  0x1c   : > { %p3736_p12 = pnand %p3734_p11, %p3731_p10 }
  0x1e   : > { %3739 = shalt.err (!%p3736_p12)
}
  0x1f   : > { %s3740_s22 = scalar_lea.vmem %s4019_s19, 16  ;;  %s3747_s24 = scalar_lea.vmem %s4019_s19, 32 }
  0x20   : > { %p3741_p13 = scmp.ne.s32.totalorder %s4019_s19, %s3740_s22  ;;  %p3748_p5 = scmp.lt.s32.totalorder %s4019_s19, %s4019_s19 }
  0x21   : > { %p3749_p7 = scmp.lt.s32.totalorder %s3747_s24, %s3740_s22 }
  0x22   : > { %p3743_p0 = pnand %p3741_p13, %p4047_p8 }
  0x23   : > { %p3750_p9 = por %p3749_p7, %p3748_p5 }
  0x24   : > { %p3744_p1 = pneg %p3743_p0 }
  0x26   : > { %p3751_p2 = pnand %p3750_p9, %p3744_p1 }
  0x28   : > { %3754 = shalt.err (!%p3751_p2)
}
  0x29   : > { %3622 = dma.hbm_to_vmem [thread:$0]  (!%p4031_p6), %s4753_s3, 16, %s4019_s19, [#allocation7]  }
  0x2a   : > { %s3755_s13 = scalar_lea.hbm %s4738_s6, 128 }
  0x2b   : > { %p3756_p10 = scmp.ne.s32.totalorder %s4738_s6, %s3755_s13  ;;  %p3762_p2 = scmp.lt.u32.totalorder %s3755_s13, %s4738_s6 }
  0x2d   : > { %p3758_p11 = pnand %p3756_p10, %p4047_p8 }
  0x2f   : > { %p3759_p12 = pneg %p3758_p11 }
  0x31   : > { %p3764_p13 = pnand %p3762_p2, %p3759_p12 }
  0x33   : > { %3767 = shalt.err (!%p3764_p13)
}
  0x34   : > { %s3768_s19 = scalar_lea.vmem %s4027_s23, 128  ;;  %p3776_p7 = scmp.lt.s32.totalorder %s4027_s23, %s4027_s23 }
  0x35   : > { %p3769_p0 = scmp.ne.s32.totalorder %s4027_s23, %s3768_s19  ;;  %p3777_p9 = scmp.lt.s32.totalorder %s3768_s19, %s3768_s19 }
  0x37   : > { %p3771_p1 = pnand %p3769_p0, %p4047_p8  ;;  %p3778_p10 = por %p3777_p9, %p3776_p7 }
  0x39   : > { %p3772_p5 = pneg %p3771_p1 }
  0x3b   : > { %p3779_p11 = pnand %p3778_p10, %p3772_p5 }
  0x3d   : > { %3782 = shalt.err (!%p3779_p11)
}
  0x3e   : > { %3628 = dma.hbm_to_vmem [thread:$0]  (!%p4031_p6), %s4738_s6, 128, %s4027_s23, [#allocation10]  }
  0x3f   : > { %s4755_s2 = sld [smem:[#allocation46_spill]] }
  0x45   : > { %s3783_s12 = scalar_lea.hbm %s4755_s2, 128 }
  0x46   : > { %p3784_p12 = scmp.ne.s32.totalorder %s4755_s2, %s3783_s12  ;;  %p3790_p0 = scmp.lt.u32.totalorder %s3783_s12, %s4755_s2 }
  0x48   : > { %p3786_p2 = pnand %p3784_p12, %p4047_p8 }
  0x4a   : > { %p3787_p13 = pneg %p3786_p2 }
  0x4c   : > { %p3792_p1 = pnand %p3790_p0, %p3787_p13 }
  0x4e   : > { %3795 = shalt.err (!%p3792_p1)
}
  0x4f   : > { %s3796_s23 = scalar_lea.vmem %s4035_s25, 128  ;;  %p3804_p10 = scmp.lt.s32.totalorder %s4035_s25, %s4035_s25 }
  0x50   : > { %p3797_p5 = scmp.ne.s32.totalorder %s4035_s25, %s3796_s23  ;;  %p3805_p11 = scmp.lt.s32.totalorder %s3796_s23, %s3796_s23 }
  0x52   : > { %p3799_p7 = pnand %p3797_p5, %p4047_p8  ;;  %p3806_p12 = por %p3805_p11, %p3804_p10 }
  0x54   : > { %p3800_p9 = pneg %p3799_p7 }
  0x56   : > { %p3807_p2 = pnand %p3806_p12, %p3800_p9 }
  0x58   : > { %3810 = shalt.err (!%p3807_p2)
}
  0x59   : > { %3619 = dma.hbm_to_vmem [thread:$0]  (!%p4031_p6), %s4755_s2, 128, %s4035_s25, [#allocation5]  }
  0x5a   : > { %s3811_s29 = scalar_lea.hbm %s4736_s4, 6400 }
  0x5b   : > { %p3812_p13 = scmp.ne.s32.totalorder %s4736_s4, %s3811_s29  ;;  %p3818_p5 = scmp.lt.u32.totalorder %s3811_s29, %s4736_s4 }
  0x5d   : > { %p3814_p0 = pnand %p3812_p13, %p4047_p8 }
  0x5f   : > { %p3815_p1 = pneg %p3814_p0 }
  0x61   : > { %p3820_p7 = pnand %p3818_p5, %p3815_p1 }
  0x63   : > { %3823 = shalt.err (!%p3820_p7)
}
  0x64   : > { %s3824_s25 = scalar_lea.vmem %s4037_s28, 6400  ;;  %p3832_p12 = scmp.lt.s32.totalorder %s4037_s28, %s4037_s28 }
  0x65   : > { %p3825_p9 = scmp.ne.s32.totalorder %s4037_s28, %s3824_s25  ;;  %p3833_p2 = scmp.lt.s32.totalorder %s3824_s25, %s3824_s25 }
  0x67   : > { %p3827_p10 = pnand %p3825_p9, %p4047_p8  ;;  %p3834_p13 = por %p3833_p2, %p3832_p12 }
  0x69   : > { %p3828_p11 = pneg %p3827_p10 }
  0x6b   : > { %p3835_p0 = pnand %p3834_p13, %p3828_p11 }
  0x6d   : > { %3838 = shalt.err (!%p3835_p0)
}
  0x6e   : > { %s3923_s16 = smov 3200   ;;  %s3924_s18 = smov 200  }
  0x6f   : > { %3625 = dma.hbm_to_vmem [thread:$0]  (!%p4031_p6), %s4736_s4, 6400, %s4037_s28, [#allocation7], %s3923_s16, %s3923_s16, %s3924_s18  }
  0x70   : > { %s3925_s19 = smov [#allocation11]   ;;  %s3926_s27 = smov [#allocation12]  }
  0x71   : > { %s369_s24 = sshll.u32 %s3925_s19, 4  ;;  %s379_s29 = sshll.u32 %s3926_s27, 4  ;;  %s370_s24 = int_to_ptr.vmem [resolvable:$true] %s369_s24  ;;  %s380_s29 = int_to_ptr.vmem [resolvable:$true] %s379_s29 }
  0x72   : > { %s3839_s13 = scalar_lea.hbm %s4739_s7, 16 }
  0x73   : > { %p3840_p1 = scmp.ne.s32.totalorder %s4739_s7, %s3839_s13  ;;  %p3846_p9 = scmp.lt.u32.totalorder %s3839_s13, %s4739_s7 }
  0x75   : > { %p3842_p5 = pnand %p3840_p1, %p4047_p8 }
  0x77   : > { %p3843_p7 = pneg %p3842_p5 }
  0x79   : > { %p3848_p10 = pnand %p3846_p9, %p3843_p7 }
  0x7b   : > { %3851 = shalt.err (!%p3848_p10)
}
  0x7c   : > { %s3852_s28 = scalar_lea.vmem %s370_s24, 16  ;;  %s3859_s23 = scalar_lea.vmem %s370_s24, 32 }
  0x7d   : > { %p3853_p11 = scmp.ne.s32.totalorder %s370_s24, %s3852_s28  ;;  %p3860_p13 = scmp.lt.s32.totalorder %s370_s24, %s370_s24 }
  0x7e   : > { %p3861_p0 = scmp.lt.s32.totalorder %s3859_s23, %s3852_s28 }
  0x7f   : > { %p3855_p12 = pnand %p3853_p11, %p4047_p8 }
  0x80   : > { %p3862_p3 = por %p3861_p0, %p3860_p13 }
  0x81   : > { %p3856_p2 = pneg %p3855_p12 }
  0x83   : > { %p3863_p4 = pnand %p3862_p3, %p3856_p2 }
  0x85   : > { %3866 = shalt.err (!%p3863_p4)
}
  0x86   : > { %3631 = dma.hbm_to_vmem [thread:$0]  (!%p4031_p6), %s4739_s7, 16, %s370_s24, [#allocation10]  }
  0x87   : > { %s3867_s27 = scalar_lea.hbm %s4740_s8, 6400 }
  0x88   : > { %p3868_p1 = scmp.ne.s32.totalorder %s4740_s8, %s3867_s27  ;;  %p3874_p4 = scmp.lt.u32.totalorder %s3867_s27, %s4740_s8 }
  0x8a   : > { %p3870_p5 = pnand %p3868_p1, %p4047_p8 }
  0x8c   : > { %p3871_p3 = pneg %p3870_p5 }
  0x8e   : > { %p3876_p7 = pnand %p3874_p4, %p3871_p3 }
  0x90   : > { %3879 = shalt.err (!%p3876_p7)
}
  0x91   : > { %s3880_s25 = scalar_lea.vmem %s380_s29, 6400  ;;  %p3888_p12 = scmp.lt.s32.totalorder %s380_s29, %s380_s29 }
  0x92   : > { %p3881_p9 = scmp.ne.s32.totalorder %s380_s29, %s3880_s25  ;;  %p3889_p2 = scmp.lt.s32.totalorder %s3880_s25, %s3880_s25 }
  0x94   : > { %p3883_p10 = pnand %p3881_p9, %p4047_p8  ;;  %p3890_p13 = por %p3889_p2, %p3888_p12 }
  0x96   : > { %p3884_p11 = pneg %p3883_p10 }
  0x98   : > { %p3891_p0 = pnand %p3890_p13, %p3884_p11 }
  0x9a   : > { %3894 = shalt.err (!%p3891_p0)
}
  0x9b   : > { %3634 = dma.hbm_to_vmem [thread:$0]  (!%p4031_p6), %s4740_s8, 6400, %s380_s29, [#allocation13], %s3923_s16, %s3923_s16, %s3924_s18  }
  0x9c   : > { %p4756_p1 = scmp.ne.s32.totalorder %s4751_s21, 0 }
  0x9e   : > { %414 = sbr.rel (%p4756_p1) target bundleno = 938 (0x3aa), region = 60 }
  0xa5   : > { %p4757_p8 = scmp.eq.s32.totalorder %s4013_s20, 0 }
  0xa7   : > { %3900 = dma.done.wait (%p4757_p8), [#allocation5], 128   ;;  %p4758_p5 = pmov %p4757_p8 }
  0xa9   : > { %3902 = vsyncadd (%p4758_p5), [#allocation5], 4294967168  ;;  %p4759_p3 = pmov %p4758_p5 }
  0xab   : > { %3904 = dma.done.wait (%p4759_p3), [#allocation7], 6416   ;;  %p4760_p4 = pmov %p4759_p3 }
  0xac   : > { %p4761_p7 = pmov %p4759_p3 }
  0xad   : > { %3906 = vsyncadd (%p4760_p4), [#allocation7], 4294960880 }
  0xae   : > { %3908 = dma.done.wait (%p4761_p7), [#allocation10], 144   ;;  %p4762_p6 = pmov %p4759_p3 }
  0xaf   : > { %p4763_p9 = pmov %p4759_p3 }
  0xb0   : > { %3910 = vsyncadd (%p4762_p6), [#allocation10], 4294967152 }
  0xb1   : > { %3912 = dma.done.wait (%p4763_p9), [#allocation13], 6400   ;;  %p4764_p10 = pmov %p4759_p3 }
  0xb2   : > { %p482_p11 = scmp.lt.s32.totalorder %s4013_s20, 7  ;;  %s486_s21 = ssub.s32 7, %s4013_s20 }
  0xb3   : > { %3914 = vsyncadd (%p4764_p10), [#allocation13], 4294960896  ;;  %p487_p12 = scmp.lt.s32.totalorder %s486_s21, 7  ;;  %p4765_p2 = scmp.ne.s32.totalorder %s4013_s20, 0 }
  0xb4   : > { %s483_s26 = scalar_select %p482_p11, %s4013_s20, 7 }
  0xb5   : > { %s4825_s21 = smov (!%p487_p12, %s486_s21), 7  ;;  %505 = sbr.rel (%p4765_p2) target bundleno = 188 (0xbc), region = 88 }
  0xb6   : > { %s3417_s15 = sshll.u32 %s483_s26, 1  ;;  %s3418_s23 = sshll.u32 %s4825_s21, 1  ;;  %v3927_v0 = vmov (!%p4765_p2), 0.0  }
  0xb7   : > { %s485_s29 = scalar_lea.vmem %s4732_s0, %s3417_s15  ;;  %s4207_s2 = scalar_lea.vmem %s4733_s1, %s3418_s23  ;;  %506 = vst [vmem:[#allocation2] sm:$0x3] (!%p4765_p2), %v3927_v0  ;;  %507 = vst [vmem:[#allocation3] sm:$0x3] (!%p4765_p2), %v3927_v0 }
  0xb8   : > { %s4212_s30 = scalar_lea.vmem %s4742_s10, %s3417_s15  ;;  %s4217_s14 = scalar_lea.vmem %s4743_s11, %s3418_s23 }
  0xbc PF: > { %v511_v1 = vld [vmem:[#allocation4] sm:$0xff]  ;;  %v4221_v2 = vld [vmem:[%s485_s29] sm:$0x3]  ;;  %vm519_vm0 = vcmask 64512   ;;  %v4747_v3 = vmov 0.0   ;;  %vm3929_vm1 = vmmov 0  }
  0xbd   : > { %3466 = vmatprep.subr.mxu0 %v4747_v3  ;;  %3468 = vmatprep.mubr.msk.f32.mxu0 %vm3929_vm1, %v4747_v3  ;;  %v3930_v4 = vmov 2   ;;  %v597_v5 = vld [vmem:[#allocation8 + $0x18] sm:$0xff]  ;;  %v622_v6 = vld [vmem:[#allocation8 + $0xe0] sm:$0xff]  ;;  %v3931_v8 = vmov 3   ;;  %v3932_v9 = vmov 4   ;;  %v3933_v10 = vmov 6  }
  0xbe   : > { %3467 = vmatpush3.msra.mxu0 %v511_v1  ;;  %3684 = vset.pattern.permute.xlu1 %v3930_v4  ;;  %v3494_v7 = vpack.c.bf16 %v622_v6, %v597_v5  ;;  %v3934_v11 = vmov 7   ;;  %v4240_v12 = vld [vmem:[#allocation2] sm:$0x3]  ;;  %v3935_v13 = vmov 1   ;;  %v595_v14 = vld [vmem:[#allocation8 + $0x8] sm:$0xff]  ;;  %v621_v18 = vld [vmem:[#allocation8 + $0xd8] sm:$0xff] }
  0xbf   : > { %3469 = vmatmul.mubr.msk.f32.vlgmr.msra.gmra.mrb[0].mxu0 %vm519_vm0, %v4221_v2  ;;  %1741 = vperm.xlu1 %3684, %v4221_v2   ;;  %v620_v15 = vld [vmem:[#allocation8 + $0xd0] sm:$0xff]  ;;  %v594_v19 = vld [vmem:[#allocation8] sm:$0xff]  ;;  %v619_v21 = vld [vmem:[#allocation8 + $0xc8] sm:$0xff]  ;;  %v3936_v28 = vmov 5   ;;  %v3937_v30 = vmov 8   ;;  %v3938_v31 = vmov 10  }
  0xc0   : > { %845 = vmatprep.mubr.f32.mxu1 %v4747_v3  ;;  %916 = vmatprep.mubr.f32.mxu0 %v4747_v3  ;;  %v3490_v16 = vpack.c.bf16 %v620_v15, %v595_v14  ;;  %v596_v17 = vld [vmem:[#allocation8 + $0x10] sm:$0xff]  ;;  %v3492_v22 = vpack.c.bf16 %v619_v21, %v594_v19  ;;  %v601_v23 = vld [vmem:[#allocation8 + $0x38] sm:$0xff]  ;;  %v626_v24 = vld [vmem:[#allocation8 + $0x100] sm:$0xff]  ;;  %v3939_v32 = vmov 0   ;;  %v3940_v34 = vmov 9  }
  0xc1   : > { %3495 = vmatprep.subr.bf16.mxu0 %v3494_v7  ;;  %v3496_v20 = vpack.c.bf16 %v621_v18, %v596_v17  ;;  %v599_v25 = vld [vmem:[#allocation8 + $0x28] sm:$0xff]  ;;  %v3502_v26 = vpack.c.bf16 %v626_v24, %v601_v23  ;;  %v624_v27 = vld [vmem:[#allocation8 + $0xf0] sm:$0xff]  ;;  %3683 = vset.pattern.permute.xlu0 %v3939_v32  ;;  %v3941_v36 = vmov 11   ;;  %v3942_v37 = vmov 12   ;;  %v3422_v41 = vld [vmem:[#allocation6] ss:$0 sm:$0xff] }
  0xc2   : > { %3491 = vmatprep.subr.bf16.mxu1 %v3490_v16  ;;  %v3498_v29 = vpack.c.bf16 %v624_v27, %v599_v25  ;;  %v4254_v33 = vld [vmem:[%s4207_s2] sm:$0x3]  ;;  %1729 = vperm.xlu0 %3683, %v4221_v2   ;;  %v1874_v35 = vld [vmem:[#allocation3] sm:$0x3]  ;;  %v3943_v38 = vmov 14   ;;  %v3944_v39 = vmov 13  }
  0xc3   : > { %3685 = vset.pattern.permute.xlu1 %v3931_v8  ;;  %3497 = vmatpush1.bf16.msra.mxu0 %v3496_v20  ;;  %v3945_v40 = vmov 15   ;;  %v600_v42 = vld [vmem:[#allocation8 + $0x30] sm:$0xff]  ;;  %v625_v43 = vld [vmem:[#allocation8 + $0xf8] sm:$0xff]  ;;  %v598_v44 = vld [vmem:[#allocation8 + $0x20] sm:$0xff]  ;;  %vm777_vm2 = vcmask 130048   ;;  %vm3238_vm3 = vcmask 123904  }
  0xc4   : > { %1747 = vperm.xlu1 %3685, %v4221_v2   ;;  %3493 = vmatpush1.bf16.msra.mxu1 %v3492_v22  ;;  %v623_v45 = vld [vmem:[#allocation8 + $0xe8] sm:$0xff]  ;;  %v605_v47 = vld [vmem:[#allocation8 + $0x58] sm:$0xff]  ;;  %v630_v50 = vld [vmem:[#allocation8 + $0x120] sm:$0xff]  ;;  %v3504_v53 = vpack.c.bf16 %v625_v43, %v600_v42  ;;  %v4746_v42 = vmov 0.0|0.0  }
  0xc5   : > { %3503 = vmatprep.subr.bf16.mxu0 %v3502_v26  ;;  %3499 = vmatprep.subr.bf16.mxu1 %v3498_v29  ;;  %v603_v51 = vld [vmem:[#allocation8 + $0x48] sm:$0xff]  ;;  %v628_v52 = vld [vmem:[#allocation8 + $0x110] sm:$0xff]  ;;  %v3500_v54 = vpack.c.bf16 %v623_v45, %v598_v44  ;;  %v629_v57 = vld [vmem:[#allocation8 + $0x118] sm:$0xff]  ;;  %v3510_v60 = vpack.c.bf16 %v630_v50, %v605_v47 }
  0xc6   : > { %1778 = vperm.xlu0 %3683, %v4240_v12   ;;  %v604_v55 = vld [vmem:[#allocation8 + $0x50] sm:$0xff]  ;;  %v602_v58 = vld [vmem:[#allocation8 + $0x40] sm:$0xff]  ;;  %v627_v59 = vld [vmem:[#allocation8 + $0x108] sm:$0xff]  ;;  %v3506_v61 = vpack.c.bf16 %v628_v52, %v603_v51 }
  0xc7   : > { %v609_v62 = vld [vmem:[#allocation8 + $0x78] sm:$0xff]  ;;  %v634_v63 = vld [vmem:[#allocation8 + $0x140] sm:$0xff]  ;;  %v607_v0 = vld [vmem:[#allocation8 + $0x68] sm:$0xff] }
  0xc8   : > { %3686 = vset.pattern.permute.xlu1 %v3932_v9  ;;  %v632_v1 = vld [vmem:[#allocation8 + $0x130] sm:$0xff]  ;;  %v633_v6 = vld [vmem:[#allocation8 + $0x138] sm:$0xff]  ;;  %v606_v7 = vld [vmem:[#allocation8 + $0x60] sm:$0xff] }
  0xc9   : > { %1753 = vperm.xlu1 %3686, %v4221_v2   ;;  %v608_v5 = vld [vmem:[#allocation8 + $0x70] sm:$0xff]  ;;  %v637_v18 = vld [vmem:[#allocation8 + $0x158] sm:$0xff]  ;;  %v610_v19 = vld [vmem:[#allocation8 + $0x80] sm:$0xff] }
  0xca   : > { %3691 = vset.pattern.permute.xlu0 %v3931_v8  ;;  %v636_v14 = vld [vmem:[#allocation8 + $0x150] sm:$0xff]  ;;  %v3520_v15 = vpack.c.bf16 %v633_v6, %v608_v5  ;;  %v635_v20 = vld [vmem:[#allocation8 + $0x148] sm:$0xff]  ;;  %v617_v23 = vld [vmem:[#allocation8 + $0xb8] sm:$0xff] }
  0xcb   : > { %1796 = vperm.xlu0 %3691, %v4240_v12   ;;  %v612_v17 = vld [vmem:[#allocation8 + $0x90] sm:$0xff]  ;;  %v642_v24 = vld [vmem:[#allocation8 + $0x180] sm:$0xff]  ;;  %v615_v25 = vld [vmem:[#allocation8 + $0xa8] sm:$0xff] }
  0xcc   : > { %v640_v26 = vld [vmem:[#allocation8 + $0x170] sm:$0xff]  ;;  %v3528_v27 = vpack.c.bf16 %v637_v18, %v612_v17  ;;  %v1958_v45 = vld [vmem:[#allocation12 + $0x8] sm:$0xff]  ;;  %v1985_v51 = vld [vmem:[#allocation12 + $0xe0] sm:$0xff] }
  0xcd   : > { %3687 = vset.pattern.permute.xlu1 %v3933_v10  ;;  %v616_v29 = vld [vmem:[#allocation8 + $0xb0] sm:$0xff]  ;;  %v1982_v50 = vld [vmem:[#allocation12 + $0xc8] sm:$0xff] }
  0xce   : > { %1765 = vperm.xlu1 %3687, %v4221_v2   ;;  %v1960_v47 = vld [vmem:[#allocation12 + $0x18] sm:$0xff] }
  0xcf   : > { %3694 = vset.pattern.permute.xlu0 %v3933_v10 }
  0xd0   : > { %1814 = vperm.xlu0 %3694, %v4240_v12  }
  0xd2   : > { %3688 = vset.pattern.permute.xlu1 %v3934_v11 }
  0xd3   : > { %1771 = vperm.xlu1 %3688, %v4221_v2  }
  0xd4   : > { %3697 = vset.pattern.permute.xlu0 %v3940_v34 }
  0xd5   : > { %1832 = vperm.xlu0 %3697, %v4240_v12  }
  0xd7   : > { %3689 = vset.pattern.permute.xlu1 %v3935_v13 }
  0xd8   : > { %1784 = vperm.xlu1 %3689, %v4240_v12  }
  0xd9   : > { %3698 = vset.pattern.permute.xlu0 %v3935_v13 }
  0xda   : > { %1735 = vperm.xlu0 %3698, %v4221_v2  }
  0xdc   : > { %3690 = vset.pattern.permute.xlu1 %v3930_v4 }
  0xdd   : > { %1790 = vperm.xlu1 %3690, %v4240_v12  }
  0xde   : > { %3097 = vperm.xlu0 %3698, %v4254_v33  }
  0xe1   : > { %3692 = vset.pattern.permute.xlu1 %v3932_v9 }
  0xe2   : > { %1802 = vperm.xlu1 %3692, %v4240_v12   ;;  %3703 = vset.pattern.permute.xlu0 %v3932_v9 }
  0xe3   : > { %3115 = vperm.xlu0 %3703, %v4254_v33  }
  0xe6   : > { %3693 = vset.pattern.permute.xlu1 %v3936_v28 }
  0xe7   : > { %1808 = vperm.xlu1 %3693, %v4240_v12   ;;  %3706 = vset.pattern.permute.xlu0 %v3934_v11 }
  0xe8   : > { %3133 = vperm.xlu0 %3706, %v4254_v33  }
  0xeb   : > { %3695 = vset.pattern.permute.xlu1 %v3934_v11 }
  0xec   : > { %1820 = vperm.xlu1 %3695, %v4240_v12   ;;  %3709 = vset.pattern.permute.xlu0 %v3930_v4 }
  0xed   : > { %3152 = vperm.xlu0 %3709, %v1874_v35  }
  0xf0   : > { %3696 = vset.pattern.permute.xlu1 %v3937_v30 }
  0xf1   : > { %1826 = vperm.xlu1 %3696, %v4240_v12   ;;  %3710 = vset.pattern.permute.xlu0 %v3936_v28 }
  0xf2   : > { %1759 = vperm.xlu0 %3710, %v4221_v2   ;;  %v3512_v2 = vpack.c.bf16 %v629_v57, %v604_v55  ;;  %v1962_v57 = vld [vmem:[#allocation12 + $0x28] sm:$0xff] }
  0xf5   : > { %3699 = vset.pattern.permute.xlu1 %v3938_v31 }
  0xf6   : > { %1838 = vperm.xlu1 %3699, %v4240_v12   ;;  %3170 = vperm.xlu0 %3710, %v1874_v35  }
  0xfa   : > { %3700 = vset.pattern.permute.xlu1 %v3939_v32  ;;  %3715 = vset.pattern.permute.xlu0 %v3937_v30  ;;  %v641_v30 = vld [vmem:[#allocation8 + $0x178] sm:$0xff] }
  0xfb   : > { %3091 = vperm.xlu1 %3700, %v4254_v33   ;;  %3188 = vperm.xlu0 %3715, %v1874_v35  }
  0xff   : > { %3701 = vset.pattern.permute.xlu1 %v3930_v4  ;;  %3718 = vset.pattern.permute.xlu0 %v3941_v36  ;;  %v3508_v4 = vpack.c.bf16 %v627_v59, %v602_v58  ;;  %v1987_v58 = vld [vmem:[#allocation12 + $0xf0] sm:$0xff]  ;;  %v1964_v59 = vld [vmem:[#allocation12 + $0x38] sm:$0xff] }
 0x100   : > { %3103 = vperm.xlu1 %3701, %v4254_v33   ;;  %1844 = vperm.xlu0 %3718, %v4240_v12  }
 0x104   : > { %3702 = vset.pattern.permute.xlu1 %v3931_v8  ;;  %3721 = vset.pattern.permute.xlu0 %v3942_v37 }
 0x105   : > { %3109 = vperm.xlu1 %3702, %v4254_v33   ;;  %3212 = vperm.xlu0 %3721, %v1874_v35  }
 0x109   : > { %3704 = vset.pattern.permute.xlu1 %v3936_v28  ;;  %3723 = vset.pattern.permute.xlu0 %v3943_v38  ;;  %v3524_v28 = vpack.c.bf16 %v635_v20, %v610_v19 }
 0x10a   : > { %3121 = vperm.xlu1 %3704, %v4254_v33   ;;  %1862 = vperm.xlu0 %3723, %v4240_v12  }
 0x10e   : > { %3705 = vset.pattern.permute.xlu1 %v3933_v10  ;;  %3726 = vset.pattern.permute.xlu0 %v3945_v40 }
 0x10f   : > { %3127 = vperm.xlu1 %3705, %v4254_v33   ;;  %3230 = vperm.xlu0 %3726, %v1874_v35  }
 0x113   : > { %3707 = vset.pattern.permute.xlu1 %v3939_v32  ;;  %v639_v32 = vld [vmem:[#allocation8 + $0x168] sm:$0xff] }
 0x114   : > { %3140 = vperm.xlu1 %3707, %v1874_v35  }
 0x118   : > { %3708 = vset.pattern.permute.xlu1 %v3935_v13  ;;  %v611_v13 = vld [vmem:[#allocation8 + $0x88] sm:$0xff] }
 0x119   : > { %3146 = vperm.xlu1 %3708, %v1874_v35   ;;  %v3522_v22 = vpack.c.bf16 %v636_v14, %v611_v13 }
 0x11d   : > { %3711 = vset.pattern.permute.xlu1 %v3931_v8  ;;  %v631_v8 = vld [vmem:[#allocation8 + $0x128] sm:$0xff] }
 0x11e   : > { %3158 = vperm.xlu1 %3711, %v1874_v35   ;;  %v3516_v16 = vpack.c.bf16 %v631_v8, %v606_v7 }
 0x122   : > { %3712 = vset.pattern.permute.xlu1 %v3932_v9  ;;  %v3518_v9 = vpack.c.bf16 %v634_v63, %v609_v62 }
 0x123   : > { %3164 = vperm.xlu1 %3712, %v1874_v35  }
 0x127   : > { %3713 = vset.pattern.permute.xlu1 %v3933_v10  ;;  %v3514_v10 = vpack.c.bf16 %v632_v1, %v607_v0 }
 0x128   : > { %3176 = vperm.xlu1 %3713, %v1874_v35  }
 0x12c   : > { %3714 = vset.pattern.permute.xlu1 %v3934_v11  ;;  %v613_v11 = vld [vmem:[#allocation8 + $0x98] sm:$0xff] }
 0x12d   : > { %3182 = vperm.xlu1 %3714, %v1874_v35  }
 0x131   : > { %3716 = vset.pattern.permute.xlu1 %v3940_v34  ;;  %v3534_v34 = vpack.c.bf16 %v642_v24, %v617_v23 }
 0x132   : > { %3194 = vperm.xlu1 %3716, %v1874_v35  }
 0x136   : > { %3717 = vset.pattern.permute.xlu1 %v3938_v31  ;;  %v614_v31 = vld [vmem:[#allocation8 + $0xa0] sm:$0xff] }
 0x137   : > { %3200 = vperm.xlu1 %3717, %v1874_v35  }
 0x13b   : > { %3719 = vset.pattern.permute.xlu1 %v3941_v36  ;;  %v3536_v36 = vpack.c.bf16 %v641_v30, %v616_v29 }
 0x13c   : > { %3206 = vperm.xlu1 %3719, %v1874_v35  }
 0x13e   : > { %v4338_v43 = vpop.permute.xlu1 %1741 }
 0x140   : > { %3720 = vset.pattern.permute.xlu1 %v3942_v37  ;;  %v3532_v37 = vpack.c.bf16 %v639_v32, %v614_v31 }
 0x141   : > { %1850 = vperm.xlu1 %3720, %v4240_v12  }
 0x143   : > { %v4340_v44 = vpop.permute.xlu1 %1747 }
 0x145   : > { %3722 = vset.pattern.permute.xlu1 %v3944_v39  ;;  %v643_v39 = vld [vmem:[#allocation8 + $0x188] sm:$0xff] }
 0x146   : > { %1856 = vperm.xlu1 %3722, %v4240_v12  }
 0x148   : > { %v4342_v55 = vpop.permute.xlu1 %1753 }
 0x14a   : > { %3218 = vperm.xlu1 %3722, %v1874_v35  }
 0x14d   : > { %v4344_v63 = vpop.permute.xlu1 %1765 }
 0x14e   : > { %3724 = vset.pattern.permute.xlu1 %v3943_v38  ;;  %v618_v38 = vld [vmem:[#allocation8 + $0xc0] sm:$0xff] }
 0x14f   : > { %3224 = vperm.xlu1 %3724, %v1874_v35   ;;  %v3530_v35 = vpack.c.bf16 %v640_v26, %v615_v25 }
 0x152   : > { %v4346_v0 = vpop.permute.xlu1 %1771 }
 0x153   : > { %3725 = vset.pattern.permute.xlu1 %v3945_v40  ;;  %v3539_v40 = vpack.c.bf16 %v643_v39, %v618_v38 }
 0x154   : > { %1868 = vperm.xlu1 %3725, %v4240_v12   ;;  %v638_v12 = vld [vmem:[#allocation8 + $0x160] sm:$0xff] }
 0x155   : > { %v3526_v21 = vpack.c.bf16 %v638_v12, %v613_v11  ;;  %v4368_v12 = vpop.permute.xlu0 %1729 }
 0x157   : > { %v4348_v1 = vpop.permute.xlu1 %1784 }
 0x159   : > { %v4372_v14 = vpop.permute.xlu0 %1778 }
 0x192   : > { %v589_v46 = vpop.f32.mrb[0].mxu0 }
 0x193   : > { %v590_v48 = vadd.f32 %v3422_v41, %v589_v46  ;;  %v3470_v49 = vpop.f32.mrb[1].mxu0  ;;  %v1875_v41 = vld [vmem:[#allocation9] sm:$0xff] }
 0x194   : > { %v1983_v46 = vld [vmem:[#allocation12 + $0xd0] sm:$0xff]  ;;  %v1957_v49 = vld [vmem:[#allocation12] sm:$0xff] }
 0x195   : > { %v4290_v56 = vmax.f32 %v590_v48, 0.0  ;;  %v3541_v48 = vpack.c.bf16 %v1983_v46, %v1958_v45  ;;  %v3543_v52 = vpack.c.bf16 %v1982_v50, %v1957_v49  ;;  %v4424_v46 = vld [vmem:[%s4737_s5] sm:$0xff] }
 0x197   : > { %3425 = vmatmul.mubr.msk.f32.vlgmr.msra.gmra.mrb[0].mxu1 %vm777_vm2, %v4290_v56  ;;  %3426 = vmatmul.mubr.msk.f32.vlgmr.msra.gmra.mrb[2].mxu0 %vm777_vm2, %v4290_v56 }
 0x198   : > { %3505 = vmatpush1.bf16.msra.mxu0 %v3504_v53  ;;  %3501 = vmatpush1.bf16.msra.mxu1 %v3500_v54  ;;  %v3545_v53 = vpack.c.bf16 %v1985_v51, %v1960_v47  ;;  %v1959_v54 = vld [vmem:[#allocation12 + $0x10] sm:$0xff] }
 0x199   : > { %987 = vmatprep.mubr.f32.mxu1 %v4747_v3  ;;  %1058 = vmatprep.mubr.f32.mxu0 %v4747_v3 }
 0x19a   : > { %3511 = vmatprep.subr.bf16.mxu0 %v3510_v60  ;;  %3507 = vmatprep.subr.bf16.mxu1 %v3506_v61  ;;  %v3549_v60 = vpack.c.bf16 %v1987_v58, %v1962_v57  ;;  %v1989_v61 = vld [vmem:[#allocation12 + $0x100] sm:$0xff] }
 0x19b   : > { %3427 = vmatmul.mubr.msk.f32.vlgmr.msra.gmra.mrb[2].mxu1 %vm777_vm2, %v4290_v56  ;;  %3428 = vmatmul.mubr.msk.f32.vlgmr.msra.gmra.mrb[4].mxu0 %vm777_vm2, %v4290_v56  ;;  %v3553_v62 = vpack.c.bf16 %v1989_v61, %v1964_v59 }
 0x19c   : > { %3513 = vmatpush1.bf16.msra.mxu0 %v3512_v2  ;;  %3509 = vmatpush1.bf16.msra.mxu1 %v3508_v4  ;;  %v4350_v2 = vpop.permute.xlu1 %1790 }
 0x19d   : > { %1129 = vmatprep.mubr.f32.mxu1 %v4747_v3  ;;  %1200 = vmatprep.mubr.f32.mxu0 %v4747_v3 }
 0x19e   : > { %3519 = vmatprep.subr.bf16.mxu0 %v3518_v9  ;;  %3515 = vmatprep.subr.bf16.mxu1 %v3514_v10 }
 0x19f   : > { %3429 = vmatmul.mubr.msk.f32.vlgmr.msra.gmra.mrb[4].mxu1 %vm777_vm2, %v4290_v56  ;;  %3430 = vmatmul.mubr.msk.f32.vlgmr.msra.gmra.mrb[6].mxu0 %vm777_vm2, %v4290_v56 }
 0x1a0   : > { %3521 = vmatpush1.bf16.msra.mxu0 %v3520_v15  ;;  %3517 = vmatpush1.bf16.msra.mxu1 %v3516_v16  ;;  %v4352_v4 = vpop.permute.xlu1 %1802  ;;  %v4376_v16 = vpop.permute.xlu0 %1796 }
 0x1a1   : > { %1271 = vmatprep.mubr.f32.mxu1 %v4747_v3  ;;  %1342 = vmatprep.mubr.f32.mxu0 %v4747_v3  ;;  %4766 = vst [vmem:[#allocation18_spill] sm:$0xff] %v4352_v4 }
 0x1a2   : > { %3527 = vmatprep.subr.bf16.mxu0 %v3526_v21  ;;  %3523 = vmatprep.subr.bf16.mxu1 %v3522_v22 }
 0x1a3   : > { %3431 = vmatmul.mubr.msk.f32.vlgmr.msra.gmra.mrb[6].mxu1 %vm777_vm2, %v4290_v56  ;;  %3432 = vmatmul.mubr.msk.f32.vlgmr.msra.gmra.mrb[8].mxu0 %vm777_vm2, %v4290_v56 }
 0x1a4   : > { %3529 = vmatpush1.bf16.msra.mxu0 %v3528_v27  ;;  %3525 = vmatpush1.bf16.msra.mxu1 %v3524_v28  ;;  %v4354_v5 = vpop.permute.xlu1 %1808  ;;  %v4380_v18 = vpop.permute.xlu0 %1814  ;;  %v652_v27 = vlaneseq }
 0x1a5   : > { %1413 = vmatprep.mubr.f32.mxu1 %v4747_v3  ;;  %1484 = vmatprep.mubr.f32.mxu0 %v4747_v3  ;;  %4767 = vst [vmem:[#allocation19_spill] sm:$0xff] %v4354_v5  ;;  %4775 = vst [vmem:[#allocation27_spill] sm:$0xff] %v4380_v18  ;;  %v1965_v5 = vld [vmem:[#allocation12 + $0x40] sm:$0xff] }
 0x1a6   : > { %3535 = vmatprep.subr.bf16.mxu0 %v3534_v34  ;;  %3531 = vmatprep.subr.bf16.mxu1 %v3530_v35  ;;  %v653_v35 = vshrl.u32 %v652_v27, 7 }
 0x1a7   : > { %3433 = vmatmul.mubr.msk.f32.vlgmr.msra.gmra.mrb[8].mxu1 %vm777_vm2, %v4290_v56  ;;  %3434 = vmatmul.mubr.msk.f32.vlgmr.msra.gmra.mrb[10].mxu0 %vm777_vm2, %v4290_v56 }
 0x1a8   : > { %3537 = vmatpush1.bf16.msra.mxu0 %v3536_v36  ;;  %3533 = vmatpush1.bf16.msra.mxu1 %v3532_v37  ;;  %v4356_v6 = vpop.permute.xlu1 %1820  ;;  %v4384_v20 = vpop.permute.xlu0 %1832  ;;  %v4419_v45 = vsub.s32 2, %v653_v35  ;;  %v4430_v49 = vsub.s32 1, %v653_v35 }
 0x1a9   : > { %1555 = vmatprep.mubr.f32.mxu1 %v4747_v3  ;;  %1626 = vmatprep.mubr.f32.mxu0 %v4747_v3  ;;  %4768 = vst [vmem:[#allocation20_spill] sm:$0xff] %v4356_v6  ;;  %4777 = vst [vmem:[#allocation29_spill] sm:$0xff] %v4384_v20  ;;  %v1991_v20 = vld [vmem:[#allocation12 + $0x110] sm:$0xff] }
 0x1aa   : > { %3478 = vmatprep.subr.mxu0 %v4747_v3  ;;  %3538 = vmatprep.subr.bf16.mxu1 %v4746_v42  ;;  %v659_v59 = vrot.slane %v4424_v46, %v4430_v49 }
 0x1ab   : > { %3435 = vmatmul.mubr.msk.f32.vlgmr.msra.gmra.mrb[10].mxu1 %vm777_vm2, %v4290_v56  ;;  %3436 = vmatmul.mubr.msk.f32.vlgmr.msra.gmra.mrb[12].mxu0 %vm777_vm2, %v4290_v56 }
 0x1ac   : > { %3479 = vmatpush3.msra.mxu0 %v1875_v41  ;;  %3540 = vmatpush3.bf16.msra.mxu1 %v3539_v40  ;;  %v4358_v7 = vpop.permute.xlu1 %1826  ;;  %v4388_v22 = vpop.permute.xlu0 %1735  ;;  %v4415_v40 = vld [vmem:[%s4737_s5 + $0x10] sm:$0xff]  ;;  %v4417_v41 = vsub.s32 0, %v653_v35 }
 0x1ad   : > { %3475 = vmatprep.mubr.msk.f32.mxu1 %vm3929_vm1, %v4747_v3  ;;  %3480 = vmatprep.mubr.msk.f32.mxu0 %vm3929_vm1, %v4747_v3 }
 0x1ae   : > { %3542 = vmatprep.subr.bf16.mxu1 %v3541_v48  ;;  %3546 = vmatprep.subr.bf16.mxu0 %v3545_v53  ;;  %v727_v53 = vrot.slane %v4415_v40, %v4419_v45 }
 0x1af   : > { %3476 = vmatmul.mubr.msk.f32.vlgmr.msra.gmra.mrb[12].mxu1 %vm777_vm2, %v4290_v56  ;;  %3481 = vmatmul.mubr.msk.f32.vlgmr.msra.gmra.mrb[14].mxu0 %vm519_vm0, %v4254_v33  ;;  %v1984_v33 = vld [vmem:[#allocation12 + $0xd8] sm:$0xff] }
 0x1b0   : > { %2207 = vmatprep.mubr.f32.mxu1 %v4747_v3  ;;  %2278 = vmatprep.mubr.f32.mxu0 %v4747_v3  ;;  %v3547_v56 = vpack.c.bf16 %v1984_v33, %v1959_v54  ;;  %v4360_v8 = vpop.permute.xlu1 %1838  ;;  %v4402_v34 = vpop.permute.xlu0 %3097  ;;  %v663_v3 = vrot.slane %v4424_v46, %v4419_v45 }
 0x1b1   : > { %3544 = vmatpush1.bf16.msra.mxu1 %v3543_v52  ;;  %4780 = vst [vmem:[#allocation32_spill] sm:$0xff] %v4402_v34  ;;  %v719_v52 = vrot.slane %v4415_v40, %v4417_v41  ;;  %v1988_v34 = vld [vmem:[#allocation12 + $0xf8] sm:$0xff] }
 0x1b2   : > { %3548 = vmatpush1.bf16.msra.mxu0 %v3547_v56  ;;  %3550 = vmatprep.subr.bf16.mxu1 %v3549_v60  ;;  %v655_v56 = vrot.slane %v4424_v46, %v4417_v41  ;;  %v4448_v60 = vsub.s32 3, %v653_v35 }
 0x1b3   : > { %3554 = vmatprep.subr.bf16.mxu0 %v3553_v62 }
 0x1b4   : > { %v4362_v9 = vpop.permute.xlu1 %3091  ;;  %v4442_v33 = vpop.permute.xlu0 %3115 }
 0x1b5   : > { %4769 = vst [vmem:[#allocation21_spill] sm:$0xff] %v4362_v9  ;;  %4783 = vst [vmem:[#allocation35_spill] sm:$0xff] %v4442_v33  ;;  %v4478_v33 = vsub.s32 6, %v653_v35 }
 0x1b7   : > { %v679_v18 = vrot.slane %v4424_v46, %v4478_v33 }
 0x1b8   : > { %v4364_v10 = vpop.permute.xlu1 %3103 }
 0x1b9   : > { %4770 = vst [vmem:[#allocation22_spill] sm:$0xff] %v4364_v10  ;;  %v1963_v10 = vld [vmem:[#allocation12 + $0x30] sm:$0xff] }
 0x1bc   : > { %v4366_v11 = vpop.permute.xlu1 %3109 }
 0x1bd   : > { %4771 = vst [vmem:[#allocation23_spill] sm:$0xff] %v4366_v11  ;;  %v1961_v11 = vld [vmem:[#allocation12 + $0x20] sm:$0xff] }
 0x1c0   : > { %v4370_v13 = vpop.permute.xlu1 %3121 }
 0x1c1   : > { %4772 = vst [vmem:[#allocation24_spill] sm:$0xff] %v4370_v13 }
 0x1c4   : > { %v4374_v15 = vpop.permute.xlu1 %3127 }
 0x1c5   : > { %4773 = vst [vmem:[#allocation25_spill] sm:$0xff] %v4374_v15 }
 0x1c8   : > { %v4378_v17 = vpop.permute.xlu1 %3140 }
 0x1c9   : > { %4774 = vst [vmem:[#allocation26_spill] sm:$0xff] %v4378_v17  ;;  %v4458_v17 = vsub.s32 5, %v653_v35 }
 0x1cc   : > { %v4382_v19 = vpop.permute.xlu1 %3146 }
 0x1cd   : > { %4776 = vst [vmem:[#allocation28_spill] sm:$0xff] %v4382_v19 }
 0x1d0   : > { %v4386_v21 = vpop.permute.xlu1 %3158 }
 0x1d1   : > { %4778 = vst [vmem:[#allocation30_spill] sm:$0xff] %v4386_v21 }
 0x1d4   : > { %v4400_v32 = vpop.permute.xlu1 %3164 }
 0x1d5   : > { %4779 = vst [vmem:[#allocation31_spill] sm:$0xff] %v4400_v32  ;;  %v4456_v32 = vsub.s32 4, %v653_v35 }
 0x1d8   : > { %v4440_v54 = vpop.permute.xlu1 %3176 }
 0x1d9   : > { %4782 = vst [vmem:[#allocation34_spill] sm:$0xff] %v4440_v54 }
 0x26a   : > { %v847_v23 = vpop.f32.mrb[0].mxu1  ;;  %v918_v24 = vpop.f32.mrb[2].mxu0 }
 0x26b   : > { %v849_v25 = vpop.f32.mrb[1].mxu1  ;;  %v4390_v26 = vpop.f32.mrb[3].mxu0  ;;  %v848_v54 = vadd.f32 %v847_v23, %v655_v56 }
 0x26e   : > { %v4392_v28 = vpop.f32.mrb[2].mxu1  ;;  %v4394_v29 = vpop.f32.mrb[4].mxu0 }
 0x26f   : > { %v4396_v30 = vpop.f32.mrb[3].mxu1  ;;  %v4398_v31 = vpop.f32.mrb[5].mxu0 }
 0x272   : > { %v4404_v36 = vpop.f32.mrb[4].mxu1  ;;  %v4406_v37 = vpop.f32.mrb[6].mxu0 }
 0x273   : > { %v4408_v38 = vpop.f32.mrb[5].mxu1  ;;  %v4410_v39 = vpop.f32.mrb[7].mxu0 }
 0x276   : > { %v4426_v47 = vpop.f32.mrb[6].mxu1  ;;  %v4428_v48 = vpop.f32.mrb[8].mxu0 }
 0x277   : > { %v4432_v50 = vpop.f32.mrb[7].mxu1  ;;  %v4434_v51 = vpop.f32.mrb[9].mxu0 }
 0x278   : > { %4781 = vst [vmem:[#allocation33_spill] sm:$0xff] %v4434_v51 }
 0x27a   : > { %v1415_v57 = vpop.f32.mrb[8].mxu1  ;;  %v1486_v58 = vpop.f32.mrb[10].mxu0 }
 0x27b   : > { %v1416_v61 = vadd.f32 %v1415_v57, %v719_v52  ;;  %v1487_v62 = vadd.f32 %v1486_v58, %v727_v53  ;;  %v4450_v27 = vpop.f32.mrb[9].mxu1  ;;  %v4452_v42 = vpop.f32.mrb[11].mxu0  ;;  %v850_v52 = vadd.f32 %v849_v25, %v659_v59  ;;  %v667_v53 = vrot.slane %v4424_v46, %v4448_v60  ;;  %v3424_v25 = vld [vmem:[%s4737_s5 + $0x18] ss:$0 sm:$0xff]  ;;  %v3438_v59 = vld [vmem:[#allocation11] ss:$0 sm:$0xff] }
 0x27c   : > { %4784 = vst [vmem:[#allocation36_spill] sm:$0xff] %v4450_v27  ;;  %4785 = vst [vmem:[#allocation37_spill] sm:$0xff] %v4452_v42  ;;  %v1993_v42 = vld [vmem:[#allocation12 + $0x120] sm:$0xff] }
 0x27d   : > { %v1719_v21 = vmax.f32 %v1416_v61, 0.0  ;;  %v1721_v19 = vmax.f32 %v1487_v62, 0.0  ;;  %v4476_v61 = vpop.permute.xlu1 %3182  ;;  %v919_v62 = vadd.f32 %v918_v24, %v663_v3  ;;  %v675_v3 = vrot.slane %v4424_v46, %v4458_v17 }
 0x27e   : > { %v4460_v15 = vpop.f32.mrb[10].mxu1  ;;  %v4462_v13 = vpop.f32.mrb[12].mxu0  ;;  %4792 = vst [vmem:[#allocation44_spill] sm:$0xff] %v4476_v61  ;;  %v4489_v24 = vsub.s32 7, %v653_v35  ;;  %v4497_v35 = vld [vmem:[%s4737_s5 + $0x8] sm:$0xff] }
 0x27f   : > { %4786 = vst [vmem:[#allocation38_spill] sm:$0xff] %v4460_v15  ;;  %4787 = vst [vmem:[#allocation39_spill] sm:$0xff] %v4462_v13  ;;  %v4467_v57 = vmul.f32 %v4358_v7, %v1719_v21  ;;  %v4470_v58 = vmul.f32 %v4360_v8, %v1721_v19  ;;  %v4472_v23 = vpop.f32.mrb[11].mxu1  ;;  %v4474_v56 = vpop.f32.mrb[13].mxu0  ;;  %v1703_v21 = vmax.f32 %v848_v54, 0.0  ;;  %v671_v8 = vrot.slane %v4424_v46, %v4456_v32  ;;  %v1986_v19 = vld [vmem:[#allocation12 + $0xe8] sm:$0xff] }
 0x280   : > { %4790 = vst [vmem:[#allocation42_spill] sm:$0xff] %v4472_v23  ;;  %4791 = vst [vmem:[#allocation43_spill] sm:$0xff] %v4474_v56  ;;  %v4483_v7 = vpop.permute.xlu0 %3133  ;;  %v1704_v56 = vmax.f32 %v850_v52, 0.0  ;;  %v921_v13 = vadd.f32 %v4390_v26, %v667_v53  ;;  %v1968_v15 = vld [vmem:[#allocation12 + $0x58] sm:$0xff]  ;;  %v1705_v6 = vmax.f32 %v919_v62, 0.0  ;;  %v3551_v27 = vpack.c.bf16 %v1986_v19, %v1961_v11  ;;  %v1967_v62 = vld [vmem:[#allocation12 + $0x50] sm:$0xff] }
 0x281   : > { %4788 = vst [vmem:[#allocation40_spill] sm:$0xff] %v4467_v57  ;;  %4789 = vst [vmem:[#allocation41_spill] sm:$0xff] %v4470_v58  ;;  %v1966_v58 = vld [vmem:[#allocation12 + $0x48] sm:$0xff]  ;;  %v3555_v52 = vpack.c.bf16 %v1988_v34, %v1963_v10  ;;  %v1732_v26 = vmul.f32 %v4368_v12, %v1703_v21  ;;  %v3561_v51 = vpack.c.bf16 %v1993_v42, %v1968_v15  ;;  %v1997_v21 = vld [vmem:[#allocation12 + $0x140] sm:$0xff] }
 0x282   : > { %4793 = vst [vmem:[#allocation45_spill] sm:$0xff] %v4483_v7  ;;  %v1699_v61 = vpop.f32.mrb[12].mxu1  ;;  %v1952_v9 = vpop.f32.mrb[14].mxu0  ;;  %v3557_v4 = vpack.c.bf16 %v1991_v20, %v1966_v58  ;;  %v1970_v11 = vld [vmem:[#allocation12 + $0x68] sm:$0xff]  ;;  %v1738_v10 = vmul.f32 %v4388_v22, %v1704_v56  ;;  %v1706_v34 = vmax.f32 %v921_v13, 0.0  ;;  %v992_v12 = vadd.f32 %v4396_v30, %v675_v3  ;;  %v1969_v20 = vld [vmem:[#allocation12 + $0x60] sm:$0xff] }
 0x283   : > { %v1700_v57 = vadd.f32 %v3424_v25, %v1699_v61  ;;  %v1953_v7 = vadd.f32 %v3438_v59, %v1952_v9  ;;  %v3477_v54 = vpop.f32.mrb[13].mxu1  ;;  %v3482_v23 = vpop.f32.mrb[15].mxu0  ;;  %v990_v9 = vadd.f32 %v4392_v28, %v671_v8  ;;  %v1990_v61 = vld [vmem:[#allocation12 + $0x108] sm:$0xff]  ;;  %v1992_v25 = vld [vmem:[#allocation12 + $0x118] sm:$0xff]  ;;  %v687_v42 = vrot.slane %v4497_v35, %v4417_v41  ;;  %v1971_v3 = vld [vmem:[#allocation12 + $0x70] sm:$0xff] }
 0x284   : > { %v4503_v59 = vpop.permute.xlu1 %3194  ;;  %v683_v54 = vrot.slane %v4424_v46, %v4489_v24  ;;  %v4513_v8 = vpop.permute.xlu0 %3152  ;;  %v3559_v13 = vpack.c.bf16 %v1990_v61, %v1965_v5  ;;  %v3563_v15 = vpack.c.bf16 %v1992_v25, %v1967_v62  ;;  %v1744_v22 = vmul.f32 %v4338_v43, %v1705_v6  ;;  %v1994_v19 = vld [vmem:[#allocation12 + $0x128] sm:$0xff]  ;;  %v1976_v61 = vld [vmem:[#allocation12 + $0x98] sm:$0xff]  ;;  %v2001_v62 = vld [vmem:[#allocation12 + $0x160] sm:$0xff] }
 0x285   : > { %v1727_v53 = vmax.f32 %v1700_v57, 0.0  ;;  %v4501_v23 = vmax.f32 %v1953_v7, 0.0  ;;  %v1995_v57 = vld [vmem:[#allocation12 + $0x130] sm:$0xff]  ;;  %v1972_v7 = vld [vmem:[#allocation12 + $0x78] sm:$0xff]  ;;  %v1707_v30 = vmax.f32 %v990_v9, 0.0  ;;  %v1061_v46 = vadd.f32 %v4394_v29, %v679_v18 }
 0x286   : > { %v4794_v56 = vmov 0.0   ;;  %v3565_v5 = vpack.c.bf16 %v1995_v57, %v1970_v11  ;;  %v1750_v43 = vmul.f32 %v4340_v44, %v1706_v34  ;;  %v1708_v6 = vmax.f32 %v992_v12, 0.0  ;;  %v1999_v9 = vld [vmem:[#allocation12 + $0x150] sm:$0xff]  ;;  %v1998_v12 = vld [vmem:[#allocation12 + $0x148] sm:$0xff]  ;;  %v2000_v57 = vld [vmem:[#allocation12 + $0x158] sm:$0xff] }
 0x287   : > { %v1733_v28 = vadd.f32 %v1732_v26, %v1727_v53  ;;  %3441 = vmatmul.mubr.msk.f32.vlgmr.msra.gmra.mrb[14].mxu1 %vm777_vm2, %v4501_v23  ;;  %3442 = vmatmul.mubr.msk.f32.vlgmr.msra.gmra.mrb[16].mxu0 %vm777_vm2, %v4501_v23  ;;  %v1996_v26 = vld [vmem:[#allocation12 + $0x138] sm:$0xff]  ;;  %v1974_v53 = vld [vmem:[#allocation12 + $0x88] sm:$0xff]  ;;  %v1063_v18 = vadd.f32 %v4398_v31, %v683_v54  ;;  %v3567_v44 = vpack.c.bf16 %v1994_v19, %v1969_v20  ;;  %v1973_v31 = vld [vmem:[#allocation12 + $0x80] sm:$0xff]  ;;  %v1709_v11 = vmax.f32 %v1061_v46, 0.0 }
 0x288   : > { %3552 = vmatpush1.bf16.msra.mxu1 %v3551_v27  ;;  %3556 = vmatpush1.bf16.msra.mxu0 %v3555_v52  ;;  %v691_v27 = vrot.slane %v4497_v35, %v4430_v49  ;;  %v3569_v52 = vpack.c.bf16 %v1997_v21, %v1972_v7  ;;  %v3571_v25 = vpack.c.bf16 %v1996_v26, %v1971_v3  ;;  %v1760_v7 = vpop.permute.xlu0 %1759  ;;  %v1980_v46 = vld [vmem:[#allocation12 + $0xb8] sm:$0xff] }
 0x289   : > { %v1739_v58 = vadd.f32 %v1738_v10, %v1733_v28  ;;  %2349 = vmatprep.mubr.f32.mxu1 %v4794_v56  ;;  %2420 = vmatprep.mubr.f32.mxu0 %v4794_v56  ;;  %v1756_v54 = vmul.f32 %v4342_v55, %v1707_v30  ;;  %v1132_v10 = vadd.f32 %v4404_v36, %v687_v42  ;;  %v1975_v28 = vld [vmem:[#allocation12 + $0x90] sm:$0xff]  ;;  %v1978_v55 = vld [vmem:[#allocation12 + $0xa8] sm:$0xff] }
 0x28a   : > { %3558 = vmatprep.subr.bf16.mxu1 %v3557_v4  ;;  %3562 = vmatprep.subr.bf16.mxu0 %v3561_v51  ;;  %v4529_v4 = vpop.permute.xlu1 %3200  ;;  %v695_v51 = vrot.slane %v4497_v35, %v4419_v45  ;;  %v699_v21 = vrot.slane %v4497_v35, %v4448_v60  ;;  %v1762_v20 = vmul.f32 %v1760_v7, %v1708_v6  ;;  %v2003_v30 = vld [vmem:[#allocation12 + $0x170] sm:$0xff] }
 0x28b   : > { %v1745_v29 = vadd.f32 %v1744_v22, %v1739_v58  ;;  %3443 = vmatmul.mubr.msk.f32.vlgmr.msra.gmra.mrb[16].mxu1 %vm777_vm2, %v4501_v23  ;;  %3444 = vmatmul.mubr.msk.f32.vlgmr.msra.gmra.mrb[18].mxu0 %vm777_vm2, %v4501_v23  ;;  %v1710_v22 = vmax.f32 %v1063_v18, 0.0  ;;  %v1134_v36 = vadd.f32 %v4408_v38, %v691_v27  ;;  %v2005_v58 = vld [vmem:[#allocation12 + $0x180] sm:$0xff]  ;;  %v703_v19 = vrot.slane %v4497_v35, %v4456_v32  ;;  %v1979_v6 = vld [vmem:[#allocation12 + $0xb0] sm:$0xff]  ;;  %v2004_v18 = vld [vmem:[#allocation12 + $0x178] sm:$0xff] }
 0x28c   : > { %3560 = vmatpush1.bf16.msra.mxu1 %v3559_v13  ;;  %3564 = vmatpush1.bf16.msra.mxu0 %v3563_v15  ;;  %v3573_v13 = vpack.c.bf16 %v1999_v9, %v1974_v53  ;;  %v3577_v15 = vpack.c.bf16 %v2001_v62, %v1976_v61  ;;  %v3575_v3 = vpack.c.bf16 %v1998_v12, %v1973_v31  ;;  %v1711_v27 = vmax.f32 %v1132_v10, 0.0  ;;  %v2006_v12 = vld [vmem:[#allocation12 + $0x188] sm:$0xff] }
 0x28d   : > { %v1751_v34 = vadd.f32 %v1750_v43, %v1745_v29  ;;  %2491 = vmatprep.mubr.f32.mxu1 %v4794_v56  ;;  %2562 = vmatprep.mubr.f32.mxu0 %v4794_v56  ;;  %v3579_v26 = vpack.c.bf16 %v2000_v57, %v1975_v28  ;;  %v1768_v38 = vmul.f32 %v4344_v63, %v1709_v11  ;;  %v2002_v43 = vld [vmem:[#allocation12 + $0x168] sm:$0xff]  ;;  %v4566_v28 = vpop.permute.xlu0 %3170 }
 0x28e   : > { %3566 = vmatprep.subr.bf16.mxu1 %v3565_v5  ;;  %3570 = vmatprep.subr.bf16.mxu0 %v3569_v52  ;;  %v1977_v5 = vld [vmem:[#allocation12 + $0xa0] sm:$0xff]  ;;  %v1203_v52 = vadd.f32 %v4406_v37, %v695_v51  ;;  %v4550_v29 = vpop.permute.xlu1 %3206  ;;  %v707_v9 = vrot.slane %v4497_v35, %v4458_v17  ;;  %v3581_v61 = vpack.c.bf16 %v2003_v30, %v1978_v55  ;;  %v1712_v37 = vmax.f32 %v1134_v36, 0.0  ;;  %v4796_v30 = vld [vmem:[#allocation33_spill] sm:$0xff] }
 0x28f   : > { %v1757_v42 = vadd.f32 %v1756_v54, %v1751_v34  ;;  %3445 = vmatmul.mubr.msk.f32.vlgmr.msra.gmra.mrb[18].mxu1 %vm777_vm2, %v4501_v23  ;;  %3446 = vmatmul.mubr.msk.f32.vlgmr.msra.gmra.mrb[20].mxu0 %vm777_vm2, %v4501_v23  ;;  %v3585_v63 = vpack.c.bf16 %v2005_v58, %v1980_v46  ;;  %v1774_v62 = vmul.f32 %v4346_v0, %v1710_v22  ;;  %v1981_v34 = vld [vmem:[#allocation12 + $0xc0] sm:$0xff]  ;;  %v4795_v22 = vmov 0.0|0.0  }
 0x290   : > { %3568 = vmatpush1.bf16.msra.mxu1 %v3567_v44  ;;  %3572 = vmatpush1.bf16.msra.mxu0 %v3571_v25  ;;  %v1205_v51 = vadd.f32 %v4410_v39, %v699_v21  ;;  %v711_v25 = vrot.slane %v4497_v35, %v4478_v33  ;;  %v3583_v31 = vpack.c.bf16 %v2002_v43, %v1977_v5  ;;  %v1713_v0 = vmax.f32 %v1203_v52, 0.0 }
 0x291   : > { %v1763_v53 = vadd.f32 %v1762_v20, %v1757_v42  ;;  %2633 = vmatprep.mubr.f32.mxu1 %v4794_v56  ;;  %2704 = vmatprep.mubr.f32.mxu0 %v4794_v56  ;;  %v3587_v54 = vpack.c.bf16 %v2004_v18, %v1979_v6  ;;  %v1781_v11 = vmul.f32 %v4372_v14, %v1711_v27  ;;  %v4800_v18 = vld [vmem:[#allocation27_spill] sm:$0xff] }
 0x292   : > { %3574 = vmatprep.subr.bf16.mxu1 %v3573_v13  ;;  %3578 = vmatprep.subr.bf16.mxu0 %v3577_v15  ;;  %v1274_v10 = vadd.f32 %v4426_v47, %v703_v19  ;;  %v715_v57 = vrot.slane %v4497_v35, %v4489_v24  ;;  %v1787_v7 = vmul.f32 %v4348_v1, %v1712_v37  ;;  %v1714_v14 = vmax.f32 %v1205_v51, 0.0  ;;  %v1851_v13 = vpop.permute.xlu1 %1850  ;;  %v4801_v37 = vld [vmem:[#allocation20_spill] sm:$0xff] }
 0x293   : > { %v1769_v44 = vadd.f32 %v1768_v38, %v1763_v53  ;;  %3447 = vmatmul.mubr.msk.f32.vlgmr.msra.gmra.mrb[20].mxu1 %vm777_vm2, %v4501_v23  ;;  %3448 = vmatmul.mubr.msk.f32.vlgmr.msra.gmra.mrb[22].mxu0 %vm777_vm2, %v4501_v23  ;;  %v1276_v21 = vadd.f32 %v4432_v50, %v707_v9  ;;  %v3590_v15 = vpack.c.bf16 %v2006_v12, %v1981_v34  ;;  %v4798_v38 = vld [vmem:[#allocation19_spill] sm:$0xff]  ;;  %v4799_v53 = vld [vmem:[#allocation36_spill] sm:$0xff]  ;;  %v4804_v12 = vld [vmem:[#allocation29_spill] sm:$0xff] }
 0x294   : > { %3576 = vmatpush1.bf16.msra.mxu1 %v3575_v3  ;;  %3580 = vmatpush1.bf16.msra.mxu0 %v3579_v26  ;;  %v1793_v35 = vmul.f32 %v4350_v2, %v1713_v0  ;;  %v1715_v55 = vmax.f32 %v1274_v10, 0.0  ;;  %v1345_v20 = vadd.f32 %v4428_v48, %v711_v25  ;;  %v723_v50 = vrot.slane %v4415_v40, %v4430_v49  ;;  %v4589_v2 = vpop.permute.xlu0 %3188  ;;  %v4797_v48 = vld [vmem:[#allocation18_spill] sm:$0xff]  ;;  %v4802_v25 = vld [vmem:[#allocation37_spill] sm:$0xff] }
 0x295   : > { %v1775_v39 = vadd.f32 %v1774_v62, %v1769_v44  ;;  %2775 = vmatprep.mubr.f32.mxu1 %v4794_v56  ;;  %2846 = vmatprep.mubr.f32.mxu0 %v4794_v56  ;;  %v1799_v36 = vmul.f32 %v4376_v16, %v1714_v14  ;;  %v1716_v42 = vmax.f32 %v1276_v21, 0.0  ;;  %v1347_v46 = vadd.f32 %v4796_v30, %v715_v57  ;;  %v4803_v0 = vld [vmem:[#allocation38_spill] sm:$0xff]  ;;  %v4808_v30 = vld [vmem:[#allocation43_spill] sm:$0xff] }
 0x296   : > { %3582 = vmatprep.subr.bf16.mxu1 %v3581_v61  ;;  %3586 = vmatprep.subr.bf16.mxu0 %v3585_v63  ;;  %v1805_v19 = vmul.f32 %v4797_v48, %v1715_v55  ;;  %v1717_v3 = vmax.f32 %v1345_v20, 0.0  ;;  %v1857_v26 = vpop.permute.xlu1 %1856  ;;  %v731_v5 = vrot.slane %v4415_v40, %v4448_v60  ;;  %v1418_v43 = vadd.f32 %v4799_v53, %v723_v50  ;;  %v4805_v14 = vld [vmem:[#allocation42_spill] sm:$0xff]  ;;  %v4807_v20 = vld [vmem:[#allocation39_spill] sm:$0xff] }
 0x297   : > { %v1782_v47 = vadd.f32 %v1781_v11, %v1775_v39  ;;  %3449 = vmatmul.mubr.msk.f32.vlgmr.msra.gmra.mrb[22].mxu1 %vm777_vm2, %v4501_v23  ;;  %3450 = vmatmul.mubr.msk.f32.vlgmr.msra.gmra.mrb[24].mxu0 %vm777_vm2, %v4501_v23  ;;  %v1811_v27 = vmul.f32 %v4798_v38, %v1716_v42  ;;  %v1718_v52 = vmax.f32 %v1347_v46, 0.0  ;;  %v739_v62 = vrot.slane %v4415_v40, %v4458_v17 }
 0x298   : > { %3584 = vmatpush1.bf16.msra.mxu1 %v3583_v31  ;;  %3588 = vmatpush1.bf16.msra.mxu0 %v3587_v54  ;;  %v1817_v9 = vmul.f32 %v4800_v18, %v1717_v3  ;;  %v1845_v63 = vpop.permute.xlu0 %1844  ;;  %v1720_v44 = vmax.f32 %v1418_v43, 0.0  ;;  %v1489_v31 = vadd.f32 %v4802_v25, %v731_v5  ;;  %v743_v10 = vrot.slane %v4415_v40, %v4478_v33 }
 0x299   : > { %v1788_v1 = vadd.f32 %v1787_v7, %v1782_v47  ;;  %2917 = vmatprep.mubr.f32.mxu1 %v4794_v56  ;;  %2988 = vmatprep.mubr.f32.mxu0 %v4794_v56  ;;  %v1823_v51 = vmul.f32 %v4801_v37, %v1718_v52  ;;  %v747_v34 = vrot.slane %v4415_v40, %v4489_v24  ;;  %v4806_v47 = vld [vmem:[#allocation40_spill] sm:$0xff] }
 0x29a   : > { %3589 = vmatprep.subr.bf16.mxu1 %v4795_v22  ;;  %v4607_v11 = vpop.permute.xlu1 %3218  ;;  %v1835_v57 = vmul.f32 %v4804_v12, %v1720_v44  ;;  %v1722_v7 = vmax.f32 %v1489_v31, 0.0  ;;  %v1560_v21 = vadd.f32 %v4805_v14, %v739_v62 }
 0x29b   : > { %v1794_v58 = vadd.f32 %v1793_v35, %v1788_v1  ;;  %3451 = vmatmul.mubr.msk.f32.vlgmr.msra.gmra.mrb[24].mxu1 %vm777_vm2, %v4501_v23  ;;  %3452 = vmatmul.mubr.msk.f32.vlgmr.msra.gmra.mrb[26].mxu0 %vm777_vm2, %v4501_v23  ;;  %v1629_v1 = vadd.f32 %v4807_v20, %v743_v10  ;;  %v1631_v46 = vadd.f32 %v4808_v30, %v747_v34 }
 0x29c   : > { %3591 = vmatpush3.bf16.msra.mxu1 %v3590_v15  ;;  %3487 = vmatprep.mubr.msk.f32.mxu1 %vm3929_vm1, %v4794_v56  ;;  %v735_v56 = vrot.slane %v4415_v40, %v4456_v32  ;;  %v4617_v35 = vpop.permute.xlu0 %3212  ;;  %v1724_v42 = vmax.f32 %v1560_v21, 0.0  ;;  %v4809_v40 = vld [vmem:[#allocation41_spill] sm:$0xff] }
 0x29d   : > { %v1800_v16 = vadd.f32 %v1799_v36, %v1794_v58  ;;  %v1847_v36 = vmul.f32 %v1845_v63, %v1722_v7  ;;  %v1726_v38 = vmax.f32 %v1631_v46, 0.0 }
 0x29e   : > { %v4620_v22 = vpop.permute.xlu1 %3224  ;;  %v1859_v5 = vmul.f32 %v1857_v26, %v1724_v42 }
 0x29f   : > { %v1806_v6 = vadd.f32 %v1805_v19, %v1800_v16  ;;  %3488 = vmatmul.mubr.msk.f32.vlgmr.msra.gmra.mrb[26].mxu1 %vm777_vm2, %v4501_v23  ;;  %v1558_v23 = vadd.f32 %v4803_v0, %v735_v56  ;;  %v1725_v19 = vmax.f32 %v1629_v1, 0.0 }
 0x2a0   : > { %v1863_v16 = vpop.permute.xlu0 %1862 }
 0x2a1   : > { %v1812_v61 = vadd.f32 %v1811_v27, %v1806_v6  ;;  %v1723_v55 = vmax.f32 %v1558_v23, 0.0  ;;  %v1865_v53 = vmul.f32 %v1863_v16, %v1725_v19  ;;  %v2007_v23 = vld [vmem:[%s4741_s9] sm:$0xff] }
 0x2a2   : > { %v1869_v52 = vpop.permute.xlu1 %1868  ;;  %v2022_v21 = vrot.slane %v2007_v23, %v4430_v49  ;;  %v2026_v20 = vrot.slane %v2007_v23, %v4419_v45  ;;  %v2030_v42 = vrot.slane %v2007_v23, %v4448_v60  ;;  %v2034_v19 = vrot.slane %v2007_v23, %v4456_v32 }
 0x2a3   : > { %v1818_v54 = vadd.f32 %v1817_v9, %v1812_v61  ;;  %v1853_v48 = vmul.f32 %v1851_v13, %v1723_v55  ;;  %v1871_v18 = vmul.f32 %v1869_v52, %v1726_v38  ;;  %v2038_v38 = vrot.slane %v2007_v23, %v4458_v17 }
 0x2a5   : > { %v1824_v39 = vadd.f32 %v1823_v51, %v1818_v54 }
 0x2a7   : > { %v1830_v15 = vadd.f32 %v4806_v47, %v1824_v39 }
 0x2a9   : > { %v1836_v50 = vadd.f32 %v1835_v57, %v1830_v15  ;;  %v2018_v57 = vrot.slane %v2007_v23, %v4417_v41 }
 0x2ab   : > { %v1842_v58 = vadd.f32 %v4809_v40, %v1836_v50  ;;  %v3440_v40 = vld [vmem:[%s4741_s9 + $0x18] ss:$0 sm:$0xff] }
 0x2ad   : > { %v1848_v3 = vadd.f32 %v1847_v36, %v1842_v58 }
 0x2af   : > { %v1854_v27 = vadd.f32 %v1853_v48, %v1848_v3 }
 0x2b1   : > { %v1860_v43 = vadd.f32 %v1859_v5, %v1854_v27 }
 0x2b3   : > { %v1866_v6 = vadd.f32 %v1865_v53, %v1860_v43  ;;  %v2042_v53 = vrot.slane %v2007_v23, %v4478_v33  ;;  %v4810_v43 = vld [vmem:[#allocation21_spill] sm:$0xff] }
 0x2b5   : > { %v1872_v9 = vadd.f32 %v1871_v18, %v1866_v6 }
 0x2b7   : > { %v1873_v56 = vmax.f32 %v1872_v9, 0.0 }
 0x2b9   : > { %3236 = vst [vmem:[#allocation2] sm:$0x3] %v1873_v56  ;;  %3239 = vst.msk [vmem:[%s4212_s30] sm:$0x3] %vm3238_vm3, %v1873_v56  ;;  %v2008_v56 = vld [vmem:[%s4741_s9 + $0x8] sm:$0xff] }
 0x35a   : > { %v2209_v61 = vpop.f32.mrb[14].mxu1  ;;  %v2280_v13 = vpop.f32.mrb[16].mxu0 }
 0x35b   : > { %v2211_v63 = vpop.f32.mrb[15].mxu1  ;;  %v2282_v62 = vpop.f32.mrb[17].mxu0  ;;  %v2210_v55 = vadd.f32 %v2209_v61, %v2018_v57  ;;  %v2281_v48 = vadd.f32 %v2280_v13, %v2026_v20  ;;  %v2046_v13 = vrot.slane %v2007_v23, %v4489_v24  ;;  %v2050_v20 = vrot.slane %v2008_v56, %v4417_v41 }
 0x35c   : > { %v2212_v36 = vadd.f32 %v2211_v63, %v2022_v21  ;;  %v2283_v5 = vadd.f32 %v2282_v62, %v2030_v42  ;;  %v4811_v63 = vld [vmem:[#allocation32_spill] sm:$0xff]  ;;  %v2058_v23 = vrot.slane %v2008_v56, %v4419_v45 }
 0x35d   : > { %v3065_v58 = vmax.f32 %v2210_v55, 0.0  ;;  %v3067_v18 = vmax.f32 %v2281_v48, 0.0 }
 0x35e   : > { %v2351_v37 = vpop.f32.mrb[16].mxu1  ;;  %v2422_v51 = vpop.f32.mrb[18].mxu0  ;;  %v3066_v16 = vmax.f32 %v2212_v36, 0.0  ;;  %v3068_v62 = vmax.f32 %v2283_v5, 0.0  ;;  %v4812_v36 = vld [vmem:[#allocation22_spill] sm:$0xff] }
 0x35f   : > { %v2353_v26 = vpop.f32.mrb[17].mxu1  ;;  %v2424_v44 = vpop.f32.mrb[19].mxu0  ;;  %v3094_v6 = vmul.f32 %v4810_v43, %v3065_v58  ;;  %v2352_v9 = vadd.f32 %v2351_v37, %v2034_v19  ;;  %v3106_v42 = vmul.f32 %v4812_v36, %v3067_v18  ;;  %v2423_v58 = vadd.f32 %v2422_v51, %v2042_v53  ;;  %v4813_v19 = vld [vmem:[#allocation23_spill] sm:$0xff]  ;;  %v4815_v18 = vld [vmem:[#allocation24_spill] sm:$0xff] }
 0x360   : > { %v3100_v57 = vmul.f32 %v4811_v63, %v3066_v16  ;;  %v2354_v21 = vadd.f32 %v2353_v26, %v2038_v38  ;;  %v2054_v37 = vrot.slane %v2008_v56, %v4430_v49  ;;  %v4814_v16 = vld [vmem:[#allocation35_spill] sm:$0xff]  ;;  %v2070_v36 = vrot.slane %v2008_v56, %v4458_v17 }
 0x361   : > { %v3071_v26 = vmax.f32 %v2423_v58, 0.0 }
 0x362   : > { %v2493_v25 = vpop.f32.mrb[18].mxu1  ;;  %v4626_v31 = vpop.f32.mrb[20].mxu0 }
 0x363   : > { %v2495_v54 = vpop.f32.mrb[19].mxu1  ;;  %v4628_v0 = vpop.f32.mrb[21].mxu0  ;;  %v2494_v38 = vadd.f32 %v2493_v25, %v2050_v20 }
 0x364   : > { %v2496_v53 = vadd.f32 %v2495_v54, %v2054_v37  ;;  %v4818_v54 = vld [vmem:[#allocation26_spill] sm:$0xff] }
 0x366   : > { %v4633_v10 = vpop.f32.mrb[20].mxu1  ;;  %v4635_v39 = vpop.f32.mrb[22].mxu0  ;;  %v3074_v20 = vmax.f32 %v2496_v53, 0.0 }
 0x367   : > { %v4637_v34 = vpop.f32.mrb[21].mxu1  ;;  %v4639_v12 = vpop.f32.mrb[23].mxu0 }
 0x36a   : > { %v4642_v7 = vpop.f32.mrb[22].mxu1  ;;  %v4644_v14 = vpop.f32.mrb[24].mxu0 }
 0x36b   : > { %v4647_v47 = vpop.f32.mrb[23].mxu1  ;;  %v4649_v15 = vpop.f32.mrb[25].mxu0 }
 0x36e   : > { %v4652_v1 = vpop.f32.mrb[24].mxu1  ;;  %v4654_v50 = vpop.f32.mrb[26].mxu0 }
 0x36f   : > { %v4657_v30 = vpop.f32.mrb[25].mxu1  ;;  %v4659_v46 = vpop.f32.mrb[27].mxu0 }
 0x372   : > { %v3061_v3 = vpop.f32.mrb[26].mxu1 }
 0x373   : > { %v3062_v27 = vadd.f32 %v3440_v40, %v3061_v3  ;;  %v3489_v52 = vpop.f32.mrb[27].mxu1  ;;  %v3069_v40 = vmax.f32 %v2352_v9, 0.0  ;;  %v3112_v3 = vmul.f32 %v4813_v19, %v3068_v62  ;;  %v4816_v62 = vld [vmem:[#allocation25_spill] sm:$0xff] }
 0x374   : > { %v3070_v52 = vmax.f32 %v2354_v21, 0.0  ;;  %v3130_v21 = vmul.f32 %v4816_v62, %v3071_v26 }
 0x375   : > { %v3089_v61 = vmax.f32 %v3062_v27, 0.0  ;;  %v2425_v27 = vadd.f32 %v2424_v44, %v2046_v13  ;;  %v3118_v5 = vmul.f32 %v4814_v16, %v3069_v40  ;;  %v3073_v44 = vmax.f32 %v2494_v38, 0.0 }
 0x376   : > { %v3124_v9 = vmul.f32 %v4815_v18, %v3070_v52  ;;  %v2565_v13 = vadd.f32 %v4626_v31, %v2058_v23  ;;  %v2009_v31 = vld [vmem:[%s4741_s9 + $0x10] sm:$0xff] }
 0x377   : > { %v3095_v55 = vadd.f32 %v3094_v6, %v3089_v61  ;;  %v2062_v61 = vrot.slane %v2008_v56, %v4448_v60  ;;  %v3072_v51 = vmax.f32 %v2425_v27, 0.0  ;;  %v3143_v37 = vmul.f32 %v4818_v54, %v3073_v44 }
 0x378   : > { %v3075_v19 = vmax.f32 %v2565_v13, 0.0  ;;  %v2078_v27 = vrot.slane %v2008_v56, %v4489_v24  ;;  %v2082_v26 = vrot.slane %v2009_v31, %v4417_v41  ;;  %v2086_v18 = vrot.slane %v2009_v31, %v4430_v49 }
 0x379   : > { %v3101_v48 = vadd.f32 %v3100_v57, %v3095_v55  ;;  %v2066_v57 = vrot.slane %v2008_v56, %v4456_v32  ;;  %v2567_v40 = vadd.f32 %v4628_v0, %v2062_v61  ;;  %v2638_v0 = vadd.f32 %v4637_v34, %v2070_v36  ;;  %v4821_v34 = vld [vmem:[#allocation31_spill] sm:$0xff] }
 0x37a   : > { %v3155_v38 = vmul.f32 %v4513_v8, %v3075_v19  ;;  %v2778_v41 = vadd.f32 %v4642_v7, %v2082_v26  ;;  %v2094_v44 = vrot.slane %v2009_v31, %v4448_v60  ;;  %v2780_v49 = vadd.f32 %v4647_v47, %v2086_v18  ;;  %v4823_v7 = vld [vmem:[#allocation44_spill] sm:$0xff] }
 0x37b   : > { %v3107_v43 = vadd.f32 %v3106_v42, %v3101_v48  ;;  %v4817_v42 = vld [vmem:[#allocation45_spill] sm:$0xff]  ;;  %v2074_v48 = vrot.slane %v2008_v56, %v4478_v33  ;;  %v3076_v16 = vmax.f32 %v2567_v40, 0.0  ;;  %v3078_v53 = vmax.f32 %v2638_v0, 0.0 }
 0x37c   : > { %v3136_v25 = vmul.f32 %v4817_v42, %v3072_v51  ;;  %v2709_v56 = vadd.f32 %v4639_v12, %v2078_v27  ;;  %v2098_v36 = vrot.slane %v2009_v31, %v4456_v32  ;;  %v4822_v12 = vld [vmem:[#allocation34_spill] sm:$0xff]  ;;  %v2102_v40 = vrot.slane %v2009_v31, %v4458_v17 }
 0x37d   : > { %v3113_v6 = vadd.f32 %v3112_v3, %v3107_v43  ;;  %v2636_v3 = vadd.f32 %v4633_v10, %v2066_v57  ;;  %v4819_v43 = vld [vmem:[#allocation28_spill] sm:$0xff]  ;;  %v2707_v10 = vadd.f32 %v4635_v39, %v2074_v48  ;;  %v2090_v57 = vrot.slane %v2009_v31, %v4419_v45 }
 0x37e   : > { %v3149_v23 = vmul.f32 %v4819_v43, %v3074_v20  ;;  %v3173_v39 = vmul.f32 %v4566_v28, %v3078_v53  ;;  %v3080_v13 = vmax.f32 %v2709_v56, 0.0  ;;  %v3082_v48 = vmax.f32 %v2780_v49, 0.0 }
 0x37f   : > { %v3119_v63 = vadd.f32 %v3118_v5, %v3113_v6  ;;  %v3077_v6 = vmax.f32 %v2636_v3, 0.0  ;;  %v2849_v45 = vadd.f32 %v4644_v14, %v2090_v57  ;;  %v2851_v60 = vadd.f32 %v4649_v15, %v2094_v44 }
 0x380   : > { %v2106_v54 = vrot.slane %v2009_v31, %v4478_v33  ;;  %v2920_v32 = vadd.f32 %v4652_v1, %v2098_v36  ;;  %v2110_v3 = vrot.slane %v2009_v31, %v4489_v24  ;;  %v3197_v14 = vmul.f32 %v4503_v59, %v3082_v48 }
 0x381   : > { %v3125_v55 = vadd.f32 %v3124_v9, %v3119_v63  ;;  %v4820_v9 = vld [vmem:[#allocation30_spill] sm:$0xff]  ;;  %v3167_v62 = vmul.f32 %v4821_v34, %v3077_v6  ;;  %v2922_v17 = vadd.f32 %v4657_v30, %v2102_v40 }
 0x382   : > { %v3161_v51 = vmul.f32 %v4820_v9, %v3076_v16  ;;  %v3085_v15 = vmax.f32 %v2920_v32, 0.0  ;;  %v2993_v1 = vadd.f32 %v4659_v46, %v2110_v3 }
 0x383   : > { %v3131_v58 = vadd.f32 %v3130_v21, %v3125_v55  ;;  %v3079_v21 = vmax.f32 %v2707_v10, 0.0  ;;  %v3086_v16 = vmax.f32 %v2922_v17, 0.0 }
 0x384   : > { %v3215_v24 = vmul.f32 %v4617_v35, %v3085_v15 }
 0x385   : > { %v3137_v52 = vadd.f32 %v3136_v25, %v3131_v58  ;;  %v3179_v42 = vmul.f32 %v4822_v12, %v3079_v21  ;;  %v3081_v25 = vmax.f32 %v2778_v41, 0.0  ;;  %v3185_v58 = vmul.f32 %v4823_v7, %v3080_v13 }
 0x386   : > { %v3221_v30 = vmul.f32 %v4607_v11, %v3086_v16 }
 0x387   : > { %v3144_v5 = vadd.f32 %v3143_v37, %v3137_v52  ;;  %v3191_v47 = vmul.f32 %v4589_v2, %v3081_v25  ;;  %v3083_v37 = vmax.f32 %v2849_v45, 0.0  ;;  %v3084_v52 = vmax.f32 %v2851_v60, 0.0 }
 0x389   : > { %v3150_v61 = vadd.f32 %v3149_v23, %v3144_v5  ;;  %v3203_v43 = vmul.f32 %v4529_v4, %v3083_v37  ;;  %v2991_v23 = vadd.f32 %v4654_v50, %v2106_v54  ;;  %v3209_v2 = vmul.f32 %v4550_v29, %v3084_v52  ;;  %v3231_v4 = vpop.permute.xlu0 %3230 }
 0x38a   : > { %v3088_v5 = vmax.f32 %v2993_v1, 0.0 }
 0x38b   : > { %v3156_v63 = vadd.f32 %v3155_v38, %v3150_v61  ;;  %v3087_v59 = vmax.f32 %v2991_v23, 0.0 }
 0x38c   : > { %v3233_v10 = vmul.f32 %v3231_v4, %v3088_v5 }
 0x38d   : > { %v3162_v8 = vadd.f32 %v3161_v51, %v3156_v63  ;;  %v3227_v38 = vmul.f32 %v4620_v22, %v3087_v59 }
 0x38f   : > { %v3168_v55 = vadd.f32 %v3167_v62, %v3162_v8 }
 0x391   : > { %v3174_v20 = vadd.f32 %v3173_v39, %v3168_v55 }
 0x393   : > { %v3180_v28 = vadd.f32 %v3179_v42, %v3174_v20 }
 0x395   : > { %v3186_v19 = vadd.f32 %v3185_v58, %v3180_v28 }
 0x397   : > { %v3192_v27 = vadd.f32 %v3191_v47, %v3186_v19 }
 0x399   : > { %v3198_v33 = vadd.f32 %v3197_v14, %v3192_v27 }
 0x39b   : > { %v3204_v0 = vadd.f32 %v3203_v43, %v3198_v33 }
 0x39d   : > { %v3210_v31 = vadd.f32 %v3209_v2, %v3204_v0 }
 0x39f   : > { %v3216_v26 = vadd.f32 %v3215_v24, %v3210_v31 }
 0x3a1   : > { %v3222_v50 = vadd.f32 %v3221_v30, %v3216_v26 }
 0x3a3   : > { %v3228_v6 = vadd.f32 %v3227_v38, %v3222_v50 }
 0x3a5   : > { %v3234_v29 = vadd.f32 %v3233_v10, %v3228_v6 }
 0x3a7   : > { %v3235_v61 = vmax.f32 %v3234_v29, 0.0 }
 0x3a9   : > { %3237 = vst [vmem:[#allocation3] sm:$0x3] %v3235_v61  ;;  %3240 = vst.msk [vmem:[%s4217_s14] sm:$0x3] %vm3238_vm3, %v3235_v61 }
 0x3aa PF: > { %s26_s17 = sadd.s32 1, %s3917_s17  }
 0x3ab   : > { %p23_p13 = scmp.ge.s32.totalorder %s26_s17, 10  }
 0x3ad   :  { %25 = sbr.rel (!%p23_p13) target bundleno = 7 (0x7), region = 134 }
 0x3b4   :  { %3277 = vsyncpa [#allocation5], 1 }
 0x3b5   :  { %3279 = vsyncpa [#allocation5 + $0x1], 1 }
 0x3b6   :  { %3280 = vsyncpa [#allocation7], 1 }
 0x3b7   :  { %3281 = vsyncpa [#allocation10], 1 }
 0x3b8   :  { %3282 = vsyncpa [#allocation13], 1 }

</bundles_post_ra>
